<compile_context>
chip_gen: v7x
topology: tpu7x:2x2x1
jax: 0.10.0
libtpu: 0.0.40
codegen_flags: <defaults>
</compile_context>

<pallas_src>
import functools

import jax
import jax.numpy as jnp
import numpy as np
from jax.experimental import pallas as pl
from jax.experimental.pallas import tpu as pltpu


def _coherence_kernel(nseg, step, P, F, Fp, G, C_T, K,
                      xt_ref, xd_ref, w_ref, st_ref, sd_ref, out_ref):
    """Grid = (ceil(B/G),).  One step computes coherence for G packed batches."""
    W = G * C_T * K
    w = w_ref[...]            # (2*Fp, P)   shared windowed rDFT operator (real|imag rows)
    st = st_ref[...]          # (G*C_T, W)  0/1 selection: (g,c) target col -> (g,c,k) lane
    sd = sd_ref[...]          # (G*K,  W)   0/1 selection: (g,k) database col -> (g,c,k) lane

    pxx = jnp.zeros((Fp, G * C_T), jnp.float32)
    pyy = jnp.zeros((Fp, G * K), jnp.float32)
    pxy_r = jnp.zeros((Fp, W), jnp.float32)
    pxy_i = jnp.zeros((Fp, W), jnp.float32)

    # Per-segment small matmuls: each iteration's spectrum dies inside the
    # iteration, so only the accumulators stay live across the unrolled loop.
    for n in range(nseg):                       # static trip count (trace-time)
        off = n * step                          # static; step is sublane-aligned here
        xs_t = xt_ref[0, pl.ds(off, P), :]      # (P, G*C_T) aligned sublane window
        xs_d = xd_ref[0, pl.ds(off, P), :]      # (P, G*K)
        rt = jnp.dot(w, xs_t, preferred_element_type=jnp.float32)   # (2Fp, G*C_T)
        rd = jnp.dot(w, xs_d, preferred_element_type=jnp.float32)   # (2Fp, G*K)
        # Broadcast to the dense (g, c, k) pair-lane axis on the MXU.
        rtb = jnp.dot(rt, st, preferred_element_type=jnp.float32)   # (2Fp, W)
        rdb = jnp.dot(rd, sd, preferred_element_type=jnp.float32)   # (2Fp, W)

        tr, ti = rt[:Fp], rt[Fp:]
        dr, di = rd[:Fp], rd[Fp:]
        tbr, tbi = rtb[:Fp], rtb[Fp:]
        dbr, dbi = rdb[:Fp], rdb[Fp:]

        pxx = pxx + (tr * tr + ti * ti)                     # (Fp, G*C_T)
        pyy = pyy + (dr * dr + di * di)                     # (Fp, G*K)
        # conj(T)*D = (TrDr + TiDi) + i (TrDi - TiDr), fully lane-dense VPU work.
        pxy_r = pxy_r + (tbr * dbr + tbi * dbi)             # (Fp, W)
        pxy_i = pxy_i + (tbr * dbi - tbi * dbr)             # (Fp, W)

    # 1/nseg factors cancel between |Pxy|^2 and Pxx*Pyy -> fold into epsilon.
    eps = jnp.float32(1e-10 * nseg * nseg)
    num = pxy_r * pxy_r + pxy_i * pxy_i                     # (Fp, W)
    den = (jnp.dot(pxx, st, preferred_element_type=jnp.float32) *
           jnp.dot(pyy, sd, preferred_element_type=jnp.float32)) + eps
    # Exact divide: the scores feed top_k, approx reciprocal could flip near-ties.
    coh = num / den
    # Padded frequency rows (F..Fp) are exactly zero -> divide by the true F only.
    out_ref[0] = jnp.sum(coh, axis=0, keepdims=True) * jnp.float32(1.0 / F)


def coherence_scores_pallas(target, database, nperseg):
    """Pallas version of vectorized_compute_coherence -> (B, C_T, K) scores."""
    B, C_T, L = target.shape
    _, K, _ = database.shape
    P = nperseg
    step = P - P // 2
    nseg = (L - P) // step + 1
    F = P // 2 + 1
    Fp = ((F + 7) // 8) * 8                 # pad freq rows to a sublane multiple
    # The torch reference slices target channels with `[:, :nseg]`; the module's
    # later .view() only works when that slice is a no-op (C_T <= nseg).
    assert C_T <= nseg, "module semantics require C_T <= number of segments"
    # Per-segment sublane windows stay aligned when step is a multiple of 8
    # (true for the usual even nperseg); correctness does not depend on it.

    Ctot = C_T + K
    # Batch-pack the lane axis toward 128 lanes, but keep >= 2 grid steps when
    # B >= 2 so both v7x TensorCores get batches.
    G = max(1, min(128 // Ctot if Ctot <= 128 else 1, (B + 1) // 2))
    nB = -(-B // G)
    Bp = nB * G
    W = G * C_T * K

    tgt = target.astype(jnp.float32)
    db = database.astype(jnp.float32)
    if Bp != B:                              # zero-pad batches; padded scores are 0
        tgt = jnp.concatenate([tgt, jnp.zeros((Bp - B, C_T, L), jnp.float32)], 0)
        db = jnp.concatenate([db, jnp.zeros((Bp - B, K, L), jnp.float32)], 0)
    # Time-major, (group, channel)-packed lanes: (nB, L, G*C).  This rearrange is
    # required by the batch packing anyway; segment windows then slice sublanes.
    x_t = tgt.reshape(nB, G, C_T, L).transpose(0, 3, 1, 2).reshape(nB, L, G * C_T)
    x_d = db.reshape(nB, G, K, L).transpose(0, 3, 1, 2).reshape(nB, L, G * K)

    # Shared small windowed rDFT operator (periodic Hann; real rows, -sin imag
    # rows; zero-padded to Fp so the real/imag halves stay sublane-aligned).
    s = np.arange(P, dtype=np.float64)
    f = np.arange(F, dtype=np.float64)
    window = 0.5 - 0.5 * np.cos(2.0 * np.pi * s / P)
    ang = 2.0 * np.pi * f[:, None] * s[None, :] / P
    w_np = np.zeros((2 * Fp, P), np.float64)
    w_np[:F] = window[None, :] * np.cos(ang)
    w_np[Fp:Fp + F] = -window[None, :] * np.sin(ang)
    w_op = jnp.asarray(w_np, dtype=jnp.float32)

    # Constant 0/1 selection matrices mapping packed channel columns onto the
    # dense (g, c, k) pair-lane axis (broadcast happens on the MXU).
    j = np.arange(W)
    gj, cj, kj = j // (C_T * K), (j // K) % C_T, j % K
    st_np = np.zeros((G * C_T, W), np.float32)
    st_np[gj * C_T + cj, j] = 1.0
    sd_np = np.zeros((G * K, W), np.float32)
    sd_np[gj * K + kj, j] = 1.0
    s_t = jnp.asarray(st_np)
    s_d = jnp.asarray(sd_np)

    kernel = functools.partial(_coherence_kernel, nseg, step, P, F, Fp, G, C_T, K)

    bytes_accessed = 4 * (x_t.size + x_d.size + w_op.size + s_t.size + s_d.size
                          + nB * W)
    mxu_flops = 2 * nB * (2 * Fp) * G * Ctot * (nseg * (P + W) + W)
    vpu_flops = nB * Fp * W * (8 * nseg + 6)
    vmem_limit = int(min(64 << 20, max(16 << 20, 8 * bytes_accessed)))

    packed = pl.pallas_call(
        kernel,
        out_shape=jax.ShapeDtypeStruct((nB, 1, W), jnp.float32),
        grid_spec=pltpu.PrefetchScalarGridSpec(
            num_scalar_prefetch=0,
            grid=(nB,),
            in_specs=[
                pl.BlockSpec((1, L, G * C_T), lambda b: (b, 0, 0)),
                pl.BlockSpec((1, L, G * K), lambda b: (b, 0, 0)),
                pl.BlockSpec((2 * Fp, P), lambda b: (0, 0)),
                pl.BlockSpec((G * C_T, W), lambda b: (0, 0)),
                pl.BlockSpec((G * K, W), lambda b: (0, 0)),
            ],
            out_specs=pl.BlockSpec((1, 1, W), lambda b: (b, 0, 0)),
        ),
        compiler_params=pltpu.CompilerParams(
            dimension_semantics=("parallel",),
            vmem_limit_bytes=vmem_limit),
        cost_estimate=pl.CostEstimate(
            flops=int(mxu_flops + vpu_flops),
            transcendentals=0,
            bytes_accessed=int(bytes_accessed)),
    )(x_t, x_d, w_op, s_t, s_d)

    # lanes are ordered (g, c, k) -> rows of the packed output map to batches.
    scores = packed.reshape(nB * G, C_T, K)[:B]
    return scores


def ts_coher_analysis_forward(target_series, ts_database, *, nperseg, nref):
    """Full TS_CoherAnalysis.forward: returns top-nref sequences (B, C_T, nref, L)."""
    B, C_T, L = target_series.shape
    scores = coherence_scores_pallas(target_series, ts_database, nperseg)   # (B, C_T, K)
    # TODO(synk): top-k + gather have no clean Pallas equivalent; done in JAX glue.
    _, topk_idx = jax.lax.top_k(scores, nref)                               # (B, C_T, nref)
    b_idx = jnp.arange(B)[:, None, None]
    topk_sequences = ts_database[b_idx, topk_idx]                           # (B, C_T, nref, L)
    return topk_sequences, scores


def _coherence_scores_ref(target, database, nperseg):
    """Pure-JAX reference mirroring the torch code (uses jnp.fft.rfft)."""
    B, C_T, L = target.shape
    step = nperseg - nperseg // 2
    nseg = (L - nperseg) // step + 1

    def segment(x):
        return jnp.stack([x[..., n * step:n * step + nperseg] for n in range(nseg)],
                         axis=-2)

    t_seg = segment(target)[:, :nseg]          # torch's `[:, :nseg]` channel slice
    d_seg = segment(database)
    s = jnp.arange(nperseg, dtype=jnp.float32)
    window = 0.5 - 0.5 * jnp.cos(2.0 * jnp.pi * s / nperseg)
    ft = jnp.fft.rfft(t_seg * window, axis=-1)
    fd = jnp.fft.rfft(d_seg * window, axis=-1)
    pxy = jnp.einsum('bcns,bkns->bckns', jnp.conj(ft), fd).mean(axis=3)
    pxx = (jnp.abs(ft) ** 2).mean(axis=2)
    pyy = (jnp.abs(fd) ** 2).mean(axis=2)
    coh = jnp.abs(pxy) ** 2 / (pxx[:, :, None, :] * pyy[:, None, :, :] + 1e-10)
    return coh.mean(axis=-1)


if __name__ == "__main__":
    # configs: nperseg=16, nref=3 ; shapes: B=2, C_T=2, K=21-C_T=19, L=64
    B, C_T, K, L = 2, 2, 19, 64
    nperseg, nref = 16, 3

    key = jax.random.PRNGKey(0)
    k1, k2 = jax.random.split(key)
    target_series = jax.random.normal(k1, (B, C_T, L), dtype=jnp.float32)
    ts_database = jax.random.normal(k2, (B, K, L), dtype=jnp.float32)

    topk_sequences, scores = ts_coher_analysis_forward(
        target_series, ts_database, nperseg=nperseg, nref=nref)
    topk_sequences = jax.block_until_ready(topk_sequences)
    scores = jax.block_until_ready(scores)

    assert topk_sequences.shape == (B, C_T, nref, L)

    ref_scores = _coherence_scores_ref(target_series, ts_database, nperseg)
    assert jnp.allclose(scores, ref_scores, rtol=1e-3, atol=1e-3), (
        "coherence scores mismatch vs. pure-JAX reference")

    print("KERNEL_OK")
</pallas_src>

<mosaic_0001>
module attributes {stable_mosaic.version = 11 : i64} {
  func.func @_coherence_kernel(%arg0: i32, %arg1: memref<1x64x2xf32, #tpu.memory_space<vmem>>, %arg2: memref<1x64x19xf32, #tpu.memory_space<vmem>>, %arg3: memref<32x16xf32, #tpu.memory_space<vmem>>, %arg4: memref<2x38xf32, #tpu.memory_space<vmem>>, %arg5: memref<19x38xf32, #tpu.memory_space<vmem>>, %arg6: memref<1x1x38xf32, #tpu.memory_space<vmem>>) attributes {dimension_semantics = [#tpu.dimension_semantics<parallel>], iteration_bounds = array<i64: 2>, scalar_prefetch = 0 : i64, scratch_operands = 0 : i64, tpu.core_type = #tpu.core_type<tc>, window_params = [{transform_indices = @transform_0, window_bounds = array<i64: 1, 64, 2>}, {transform_indices = @transform_1, window_bounds = array<i64: 1, 64, 19>}, {pipeline_mode = #tpu.pipeline_mode<synchronous>, transform_indices = @transform_2, window_bounds = array<i64: 32, 16>}, {pipeline_mode = #tpu.pipeline_mode<synchronous>, transform_indices = @transform_3, window_bounds = array<i64: 2, 38>}, {pipeline_mode = #tpu.pipeline_mode<synchronous>, transform_indices = @transform_4, window_bounds = array<i64: 19, 38>}, {transform_indices = @transform_5, window_bounds = array<i64: 1, 1, 38>}]} {
    %c0 = arith.constant 0 : index
    %c0_0 = arith.constant 0 : index
    %0 = vector.load %arg3[%c0, %c0_0] : memref<32x16xf32, #tpu.memory_space<vmem>>, vector<32x16xf32>
    %c0_1 = arith.constant 0 : index
    %c0_2 = arith.constant 0 : index
    %1 = vector.load %arg4[%c0_1, %c0_2] : memref<2x38xf32, #tpu.memory_space<vmem>>, vector<2x38xf32>
    %c0_3 = arith.constant 0 : index
    %c0_4 = arith.constant 0 : index
    %2 = vector.load %arg5[%c0_3, %c0_4] : memref<19x38xf32, #tpu.memory_space<vmem>>, vector<19x38xf32>
    %cst = arith.constant 0.000000e+00 : f32
    %3 = vector.broadcast %cst : f32 to vector<16x2xf32>
    %cst_5 = arith.constant 0.000000e+00 : f32
    %4 = vector.broadcast %cst_5 : f32 to vector<16x19xf32>
    %cst_6 = arith.constant 0.000000e+00 : f32
    %5 = vector.broadcast %cst_6 : f32 to vector<16x38xf32>
    %cst_7 = arith.constant 0.000000e+00 : f32
    %6 = vector.broadcast %cst_7 : f32 to vector<16x38xf32>
    %c0_8 = arith.constant 0 : index
    %c0_9 = arith.constant 0 : index
    %c0_10 = arith.constant 0 : index
    %7 = vector.load %arg1[%c0_8, %c0_9, %c0_10] : memref<1x64x2xf32, #tpu.memory_space<vmem>>, vector<1x16x2xf32>
    %8 = vector.shape_cast %7 : vector<1x16x2xf32> to vector<16x2xf32>
    %c0_11 = arith.constant 0 : index
    %c0_12 = arith.constant 0 : index
    %c0_13 = arith.constant 0 : index
    %9 = vector.load %arg2[%c0_11, %c0_12, %c0_13] : memref<1x64x19xf32, #tpu.memory_space<vmem>>, vector<1x16x19xf32>
    %10 = vector.shape_cast %9 : vector<1x16x19xf32> to vector<16x19xf32>
    %cst_14 = arith.constant dense<0.000000e+00> : vector<32x2xf32>
    %11 = tpu.matmul %0, %8, %cst_14 {dimension_numbers = #tpu.dot_dimension_numbers<[1], [0], [0], [1], [0, 0, 1, 1], [], []>} : vector<32x16xf32>, vector<16x2xf32>, vector<32x2xf32> -> vector<32x2xf32>
    %cst_15 = arith.constant dense<0.000000e+00> : vector<32x19xf32>
    %12 = tpu.matmul %0, %10, %cst_15 {dimension_numbers = #tpu.dot_dimension_numbers<[1], [0], [0], [1], [0, 0, 1, 1], [], []>} : vector<32x16xf32>, vector<16x19xf32>, vector<32x19xf32> -> vector<32x19xf32>
    %cst_16 = arith.constant dense<0.000000e+00> : vector<32x38xf32>
    %13 = tpu.matmul %11, %1, %cst_16 {dimension_numbers = #tpu.dot_dimension_numbers<[1], [0], [0], [1], [0, 0, 1, 1], [], []>} : vector<32x2xf32>, vector<2x38xf32>, vector<32x38xf32> -> vector<32x38xf32>
    %cst_17 = arith.constant dense<0.000000e+00> : vector<32x38xf32>
    %14 = tpu.matmul %12, %2, %cst_17 {dimension_numbers = #tpu.dot_dimension_numbers<[1], [0], [0], [1], [0, 0, 1, 1], [], []>} : vector<32x19xf32>, vector<19x38xf32>, vector<32x38xf32> -> vector<32x38xf32>
    %15 = vector.extract_strided_slice %11 {offsets = [0, 0], sizes = [16, 2], strides = [1, 1]} : vector<32x2xf32> to vector<16x2xf32>
    %16 = vector.extract_strided_slice %11 {offsets = [16, 0], sizes = [16, 2], strides = [1, 1]} : vector<32x2xf32> to vector<16x2xf32>
    %17 = vector.extract_strided_slice %12 {offsets = [0, 0], sizes = [16, 19], strides = [1, 1]} : vector<32x19xf32> to vector<16x19xf32>
    %18 = vector.extract_strided_slice %12 {offsets = [16, 0], sizes = [16, 19], strides = [1, 1]} : vector<32x19xf32> to vector<16x19xf32>
    %19 = vector.extract_strided_slice %13 {offsets = [0, 0], sizes = [16, 38], strides = [1, 1]} : vector<32x38xf32> to vector<16x38xf32>
    %20 = vector.extract_strided_slice %13 {offsets = [16, 0], sizes = [16, 38], strides = [1, 1]} : vector<32x38xf32> to vector<16x38xf32>
    %21 = vector.extract_strided_slice %14 {offsets = [0, 0], sizes = [16, 38], strides = [1, 1]} : vector<32x38xf32> to vector<16x38xf32>
    %22 = vector.extract_strided_slice %14 {offsets = [16, 0], sizes = [16, 38], strides = [1, 1]} : vector<32x38xf32> to vector<16x38xf32>
    %23 = arith.mulf %15, %15 : vector<16x2xf32>
    %24 = arith.mulf %16, %16 : vector<16x2xf32>
    %25 = arith.addf %23, %24 : vector<16x2xf32>
    %26 = arith.addf %3, %25 : vector<16x2xf32>
    %27 = arith.mulf %17, %17 : vector<16x19xf32>
    %28 = arith.mulf %18, %18 : vector<16x19xf32>
    %29 = arith.addf %27, %28 : vector<16x19xf32>
    %30 = arith.addf %4, %29 : vector<16x19xf32>
    %31 = arith.mulf %19, %21 : vector<16x38xf32>
    %32 = arith.mulf %20, %22 : vector<16x38xf32>
    %33 = arith.addf %31, %32 : vector<16x38xf32>
    %34 = arith.addf %5, %33 : vector<16x38xf32>
    %35 = arith.mulf %19, %22 : vector<16x38xf32>
    %36 = arith.mulf %20, %21 : vector<16x38xf32>
    %37 = arith.subf %35, %36 : vector<16x38xf32>
    %38 = arith.addf %6, %37 : vector<16x38xf32>
    %c0_18 = arith.constant 0 : index
    %c8 = arith.constant 8 : index
    %c0_19 = arith.constant 0 : index
    %39 = vector.load %arg1[%c0_18, %c8, %c0_19] : memref<1x64x2xf32, #tpu.memory_space<vmem>>, vector<1x16x2xf32>
    %40 = vector.shape_cast %39 : vector<1x16x2xf32> to vector<16x2xf32>
    %c0_20 = arith.constant 0 : index
    %c8_21 = arith.constant 8 : index
    %c0_22 = arith.constant 0 : index
    %41 = vector.load %arg2[%c0_20, %c8_21, %c0_22] : memref<1x64x19xf32, #tpu.memory_space<vmem>>, vector<1x16x19xf32>
    %42 = vector.shape_cast %41 : vector<1x16x19xf32> to vector<16x19xf32>
    %cst_23 = arith.constant dense<0.000000e+00> : vector<32x2xf32>
    %43 = tpu.matmul %0, %40, %cst_23 {dimension_numbers = #tpu.dot_dimension_numbers<[1], [0], [0], [1], [0, 0, 1, 1], [], []>} : vector<32x16xf32>, vector<16x2xf32>, vector<32x2xf32> -> vector<32x2xf32>
    %cst_24 = arith.constant dense<0.000000e+00> : vector<32x19xf32>
    %44 = tpu.matmul %0, %42, %cst_24 {dimension_numbers = #tpu.dot_dimension_numbers<[1], [0], [0], [1], [0, 0, 1, 1], [], []>} : vector<32x16xf32>, vector<16x19xf32>, vector<32x19xf32> -> vector<32x19xf32>
    %cst_25 = arith.constant dense<0.000000e+00> : vector<32x38xf32>
    %45 = tpu.matmul %43, %1, %cst_25 {dimension_numbers = #tpu.dot_dimension_numbers<[1], [0], [0], [1], [0, 0, 1, 1], [], []>} : vector<32x2xf32>, vector<2x38xf32>, vector<32x38xf32> -> vector<32x38xf32>
    %cst_26 = arith.constant dense<0.000000e+00> : vector<32x38xf32>
    %46 = tpu.matmul %44, %2, %cst_26 {dimension_numbers = #tpu.dot_dimension_numbers<[1], [0], [0], [1], [0, 0, 1, 1], [], []>} : vector<32x19xf32>, vector<19x38xf32>, vector<32x38xf32> -> vector<32x38xf32>
    %47 = vector.extract_strided_slice %43 {offsets = [0, 0], sizes = [16, 2], strides = [1, 1]} : vector<32x2xf32> to vector<16x2xf32>
    %48 = vector.extract_strided_slice %43 {offsets = [16, 0], sizes = [16, 2], strides = [1, 1]} : vector<32x2xf32> to vector<16x2xf32>
    %49 = vector.extract_strided_slice %44 {offsets = [0, 0], sizes = [16, 19], strides = [1, 1]} : vector<32x19xf32> to vector<16x19xf32>
    %50 = vector.extract_strided_slice %44 {offsets = [16, 0], sizes = [16, 19], strides = [1, 1]} : vector<32x19xf32> to vector<16x19xf32>
    %51 = vector.extract_strided_slice %45 {offsets = [0, 0], sizes = [16, 38], strides = [1, 1]} : vector<32x38xf32> to vector<16x38xf32>
    %52 = vector.extract_strided_slice %45 {offsets = [16, 0], sizes = [16, 38], strides = [1, 1]} : vector<32x38xf32> to vector<16x38xf32>
    %53 = vector.extract_strided_slice %46 {offsets = [0, 0], sizes = [16, 38], strides = [1, 1]} : vector<32x38xf32> to vector<16x38xf32>
    %54 = vector.extract_strided_slice %46 {offsets = [16, 0], sizes = [16, 38], strides = [1, 1]} : vector<32x38xf32> to vector<16x38xf32>
    %55 = arith.mulf %47, %47 : vector<16x2xf32>
    %56 = arith.mulf %48, %48 : vector<16x2xf32>
    %57 = arith.addf %55, %56 : vector<16x2xf32>
    %58 = arith.addf %26, %57 : vector<16x2xf32>
    %59 = arith.mulf %49, %49 : vector<16x19xf32>
    %60 = arith.mulf %50, %50 : vector<16x19xf32>
    %61 = arith.addf %59, %60 : vector<16x19xf32>
    %62 = arith.addf %30, %61 : vector<16x19xf32>
    %63 = arith.mulf %51, %53 : vector<16x38xf32>
    %64 = arith.mulf %52, %54 : vector<16x38xf32>
    %65 = arith.addf %63, %64 : vector<16x38xf32>
    %66 = arith.addf %34, %65 : vector<16x38xf32>
    %67 = arith.mulf %51, %54 : vector<16x38xf32>
    %68 = arith.mulf %52, %53 : vector<16x38xf32>
    %69 = arith.subf %67, %68 : vector<16x38xf32>
    %70 = arith.addf %38, %69 : vector<16x38xf32>
    %c0_27 = arith.constant 0 : index
    %c16 = arith.constant 16 : index
    %c0_28 = arith.constant 0 : index
    %71 = vector.load %arg1[%c0_27, %c16, %c0_28] : memref<1x64x2xf32, #tpu.memory_space<vmem>>, vector<1x16x2xf32>
    %72 = vector.shape_cast %71 : vector<1x16x2xf32> to vector<16x2xf32>
    %c0_29 = arith.constant 0 : index
    %c16_30 = arith.constant 16 : index
    %c0_31 = arith.constant 0 : index
    %73 = vector.load %arg2[%c0_29, %c16_30, %c0_31] : memref<1x64x19xf32, #tpu.memory_space<vmem>>, vector<1x16x19xf32>
    %74 = vector.shape_cast %73 : vector<1x16x19xf32> to vector<16x19xf32>
    %cst_32 = arith.constant dense<0.000000e+00> : vector<32x2xf32>
    %75 = tpu.matmul %0, %72, %cst_32 {dimension_numbers = #tpu.dot_dimension_numbers<[1], [0], [0], [1], [0, 0, 1, 1], [], []>} : vector<32x16xf32>, vector<16x2xf32>, vector<32x2xf32> -> vector<32x2xf32>
    %cst_33 = arith.constant dense<0.000000e+00> : vector<32x19xf32>
    %76 = tpu.matmul %0, %74, %cst_33 {dimension_numbers = #tpu.dot_dimension_numbers<[1], [0], [0], [1], [0, 0, 1, 1], [], []>} : vector<32x16xf32>, vector<16x19xf32>, vector<32x19xf32> -> vector<32x19xf32>
    %cst_34 = arith.constant dense<0.000000e+00> : vector<32x38xf32>
    %77 = tpu.matmul %75, %1, %cst_34 {dimension_numbers = #tpu.dot_dimension_numbers<[1], [0], [0], [1], [0, 0, 1, 1], [], []>} : vector<32x2xf32>, vector<2x38xf32>, vector<32x38xf32> -> vector<32x38xf32>
    %cst_35 = arith.constant dense<0.000000e+00> : vector<32x38xf32>
    %78 = tpu.matmul %76, %2, %cst_35 {dimension_numbers = #tpu.dot_dimension_numbers<[1], [0], [0], [1], [0, 0, 1, 1], [], []>} : vector<32x19xf32>, vector<19x38xf32>, vector<32x38xf32> -> vector<32x38xf32>
    %79 = vector.extract_strided_slice %75 {offsets = [0, 0], sizes = [16, 2], strides = [1, 1]} : vector<32x2xf32> to vector<16x2xf32>
    %80 = vector.extract_strided_slice %75 {offsets = [16, 0], sizes = [16, 2], strides = [1, 1]} : vector<32x2xf32> to vector<16x2xf32>
    %81 = vector.extract_strided_slice %76 {offsets = [0, 0], sizes = [16, 19], strides = [1, 1]} : vector<32x19xf32> to vector<16x19xf32>
    %82 = vector.extract_strided_slice %76 {offsets = [16, 0], sizes = [16, 19], strides = [1, 1]} : vector<32x19xf32> to vector<16x19xf32>
    %83 = vector.extract_strided_slice %77 {offsets = [0, 0], sizes = [16, 38], strides = [1, 1]} : vector<32x38xf32> to vector<16x38xf32>
    %84 = vector.extract_strided_slice %77 {offsets = [16, 0], sizes = [16, 38], strides = [1, 1]} : vector<32x38xf32> to vector<16x38xf32>
    %85 = vector.extract_strided_slice %78 {offsets = [0, 0], sizes = [16, 38], strides = [1, 1]} : vector<32x38xf32> to vector<16x38xf32>
    %86 = vector.extract_strided_slice %78 {offsets = [16, 0], sizes = [16, 38], strides = [1, 1]} : vector<32x38xf32> to vector<16x38xf32>
    %87 = arith.mulf %79, %79 : vector<16x2xf32>
    %88 = arith.mulf %80, %80 : vector<16x2xf32>
    %89 = arith.addf %87, %88 : vector<16x2xf32>
    %90 = arith.addf %58, %89 : vector<16x2xf32>
    %91 = arith.mulf %81, %81 : vector<16x19xf32>
    %92 = arith.mulf %82, %82 : vector<16x19xf32>
    %93 = arith.addf %91, %92 : vector<16x19xf32>
    %94 = arith.addf %62, %93 : vector<16x19xf32>
    %95 = arith.mulf %83, %85 : vector<16x38xf32>
    %96 = arith.mulf %84, %86 : vector<16x38xf32>
    %97 = arith.addf %95, %96 : vector<16x38xf32>
    %98 = arith.addf %66, %97 : vector<16x38xf32>
    %99 = arith.mulf %83, %86 : vector<16x38xf32>
    %100 = arith.mulf %84, %85 : vector<16x38xf32>
    %101 = arith.subf %99, %100 : vector<16x38xf32>
    %102 = arith.addf %70, %101 : vector<16x38xf32>
    %c0_36 = arith.constant 0 : index
    %c24 = arith.constant 24 : index
    %c0_37 = arith.constant 0 : index
    %103 = vector.load %arg1[%c0_36, %c24, %c0_37] : memref<1x64x2xf32, #tpu.memory_space<vmem>>, vector<1x16x2xf32>
    %104 = vector.shape_cast %103 : vector<1x16x2xf32> to vector<16x2xf32>
    %c0_38 = arith.constant 0 : index
    %c24_39 = arith.constant 24 : index
    %c0_40 = arith.constant 0 : index
    %105 = vector.load %arg2[%c0_38, %c24_39, %c0_40] : memref<1x64x19xf32, #tpu.memory_space<vmem>>, vector<1x16x19xf32>
    %106 = vector.shape_cast %105 : vector<1x16x19xf32> to vector<16x19xf32>
    %cst_41 = arith.constant dense<0.000000e+00> : vector<32x2xf32>
    %107 = tpu.matmul %0, %104, %cst_41 {dimension_numbers = #tpu.dot_dimension_numbers<[1], [0], [0], [1], [0, 0, 1, 1], [], []>} : vector<32x16xf32>, vector<16x2xf32>, vector<32x2xf32> -> vector<32x2xf32>
    %cst_42 = arith.constant dense<0.000000e+00> : vector<32x19xf32>
    %108 = tpu.matmul %0, %106, %cst_42 {dimension_numbers = #tpu.dot_dimension_numbers<[1], [0], [0], [1], [0, 0, 1, 1], [], []>} : vector<32x16xf32>, vector<16x19xf32>, vector<32x19xf32> -> vector<32x19xf32>
    %cst_43 = arith.constant dense<0.000000e+00> : vector<32x38xf32>
    %109 = tpu.matmul %107, %1, %cst_43 {dimension_numbers = #tpu.dot_dimension_numbers<[1], [0], [0], [1], [0, 0, 1, 1], [], []>} : vector<32x2xf32>, vector<2x38xf32>, vector<32x38xf32> -> vector<32x38xf32>
    %cst_44 = arith.constant dense<0.000000e+00> : vector<32x38xf32>
    %110 = tpu.matmul %108, %2, %cst_44 {dimension_numbers = #tpu.dot_dimension_numbers<[1], [0], [0], [1], [0, 0, 1, 1], [], []>} : vector<32x19xf32>, vector<19x38xf32>, vector<32x38xf32> -> vector<32x38xf32>
    %111 = vector.extract_strided_slice %107 {offsets = [0, 0], sizes = [16, 2], strides = [1, 1]} : vector<32x2xf32> to vector<16x2xf32>
    %112 = vector.extract_strided_slice %107 {offsets = [16, 0], sizes = [16, 2], strides = [1, 1]} : vector<32x2xf32> to vector<16x2xf32>
    %113 = vector.extract_strided_slice %108 {offsets = [0, 0], sizes = [16, 19], strides = [1, 1]} : vector<32x19xf32> to vector<16x19xf32>
    %114 = vector.extract_strided_slice %108 {offsets = [16, 0], sizes = [16, 19], strides = [1, 1]} : vector<32x19xf32> to vector<16x19xf32>
    %115 = vector.extract_strided_slice %109 {offsets = [0, 0], sizes = [16, 38], strides = [1, 1]} : vector<32x38xf32> to vector<16x38xf32>
    %116 = vector.extract_strided_slice %109 {offsets = [16, 0], sizes = [16, 38], strides = [1, 1]} : vector<32x38xf32> to vector<16x38xf32>
    %117 = vector.extract_strided_slice %110 {offsets = [0, 0], sizes = [16, 38], strides = [1, 1]} : vector<32x38xf32> to vector<16x38xf32>
    %118 = vector.extract_strided_slice %110 {offsets = [16, 0], sizes = [16, 38], strides = [1, 1]} : vector<32x38xf32> to vector<16x38xf32>
    %119 = arith.mulf %111, %111 : vector<16x2xf32>
    %120 = arith.mulf %112, %112 : vector<16x2xf32>
    %121 = arith.addf %119, %120 : vector<16x2xf32>
    %122 = arith.addf %90, %121 : vector<16x2xf32>
    %123 = arith.mulf %113, %113 : vector<16x19xf32>
    %124 = arith.mulf %114, %114 : vector<16x19xf32>
    %125 = arith.addf %123, %124 : vector<16x19xf32>
    %126 = arith.addf %94, %125 : vector<16x19xf32>
    %127 = arith.mulf %115, %117 : vector<16x38xf32>
    %128 = arith.mulf %116, %118 : vector<16x38xf32>
    %129 = arith.addf %127, %128 : vector<16x38xf32>
    %130 = arith.addf %98, %129 : vector<16x38xf32>
    %131 = arith.mulf %115, %118 : vector<16x38xf32>
    %132 = arith.mulf %116, %117 : vector<16x38xf32>
    %133 = arith.subf %131, %132 : vector<16x38xf32>
    %134 = arith.addf %102, %133 : vector<16x38xf32>
    %c0_45 = arith.constant 0 : index
    %c32 = arith.constant 32 : index
    %c0_46 = arith.constant 0 : index
    %135 = vector.load %arg1[%c0_45, %c32, %c0_46] : memref<1x64x2xf32, #tpu.memory_space<vmem>>, vector<1x16x2xf32>
    %136 = vector.shape_cast %135 : vector<1x16x2xf32> to vector<16x2xf32>
    %c0_47 = arith.constant 0 : index
    %c32_48 = arith.constant 32 : index
    %c0_49 = arith.constant 0 : index
    %137 = vector.load %arg2[%c0_47, %c32_48, %c0_49] : memref<1x64x19xf32, #tpu.memory_space<vmem>>, vector<1x16x19xf32>
    %138 = vector.shape_cast %137 : vector<1x16x19xf32> to vector<16x19xf32>
    %cst_50 = arith.constant dense<0.000000e+00> : vector<32x2xf32>
    %139 = tpu.matmul %0, %136, %cst_50 {dimension_numbers = #tpu.dot_dimension_numbers<[1], [0], [0], [1], [0, 0, 1, 1], [], []>} : vector<32x16xf32>, vector<16x2xf32>, vector<32x2xf32> -> vector<32x2xf32>
    %cst_51 = arith.constant dense<0.000000e+00> : vector<32x19xf32>
    %140 = tpu.matmul %0, %138, %cst_51 {dimension_numbers = #tpu.dot_dimension_numbers<[1], [0], [0], [1], [0, 0, 1, 1], [], []>} : vector<32x16xf32>, vector<16x19xf32>, vector<32x19xf32> -> vector<32x19xf32>
    %cst_52 = arith.constant dense<0.000000e+00> : vector<32x38xf32>
    %141 = tpu.matmul %139, %1, %cst_52 {dimension_numbers = #tpu.dot_dimension_numbers<[1], [0], [0], [1], [0, 0, 1, 1], [], []>} : vector<32x2xf32>, vector<2x38xf32>, vector<32x38xf32> -> vector<32x38xf32>
    %cst_53 = arith.constant dense<0.000000e+00> : vector<32x38xf32>
    %142 = tpu.matmul %140, %2, %cst_53 {dimension_numbers = #tpu.dot_dimension_numbers<[1], [0], [0], [1], [0, 0, 1, 1], [], []>} : vector<32x19xf32>, vector<19x38xf32>, vector<32x38xf32> -> vector<32x38xf32>
    %143 = vector.extract_strided_slice %139 {offsets = [0, 0], sizes = [16, 2], strides = [1, 1]} : vector<32x2xf32> to vector<16x2xf32>
    %144 = vector.extract_strided_slice %139 {offsets = [16, 0], sizes = [16, 2], strides = [1, 1]} : vector<32x2xf32> to vector<16x2xf32>
    %145 = vector.extract_strided_slice %140 {offsets = [0, 0], sizes = [16, 19], strides = [1, 1]} : vector<32x19xf32> to vector<16x19xf32>
    %146 = vector.extract_strided_slice %140 {offsets = [16, 0], sizes = [16, 19], strides = [1, 1]} : vector<32x19xf32> to vector<16x19xf32>
    %147 = vector.extract_strided_slice %141 {offsets = [0, 0], sizes = [16, 38], strides = [1, 1]} : vector<32x38xf32> to vector<16x38xf32>
    %148 = vector.extract_strided_slice %141 {offsets = [16, 0], sizes = [16, 38], strides = [1, 1]} : vector<32x38xf32> to vector<16x38xf32>
    %149 = vector.extract_strided_slice %142 {offsets = [0, 0], sizes = [16, 38], strides = [1, 1]} : vector<32x38xf32> to vector<16x38xf32>
    %150 = vector.extract_strided_slice %142 {offsets = [16, 0], sizes = [16, 38], strides = [1, 1]} : vector<32x38xf32> to vector<16x38xf32>
    %151 = arith.mulf %143, %143 : vector<16x2xf32>
    %152 = arith.mulf %144, %144 : vector<16x2xf32>
    %153 = arith.addf %151, %152 : vector<16x2xf32>
    %154 = arith.addf %122, %153 : vector<16x2xf32>
    %155 = arith.mulf %145, %145 : vector<16x19xf32>
    %156 = arith.mulf %146, %146 : vector<16x19xf32>
    %157 = arith.addf %155, %156 : vector<16x19xf32>
    %158 = arith.addf %126, %157 : vector<16x19xf32>
    %159 = arith.mulf %147, %149 : vector<16x38xf32>
    %160 = arith.mulf %148, %150 : vector<16x38xf32>
    %161 = arith.addf %159, %160 : vector<16x38xf32>
    %162 = arith.addf %130, %161 : vector<16x38xf32>
    %163 = arith.mulf %147, %150 : vector<16x38xf32>
    %164 = arith.mulf %148, %149 : vector<16x38xf32>
    %165 = arith.subf %163, %164 : vector<16x38xf32>
    %166 = arith.addf %134, %165 : vector<16x38xf32>
    %c0_54 = arith.constant 0 : index
    %c40 = arith.constant 40 : index
    %c0_55 = arith.constant 0 : index
    %167 = vector.load %arg1[%c0_54, %c40, %c0_55] : memref<1x64x2xf32, #tpu.memory_space<vmem>>, vector<1x16x2xf32>
    %168 = vector.shape_cast %167 : vector<1x16x2xf32> to vector<16x2xf32>
    %c0_56 = arith.constant 0 : index
    %c40_57 = arith.constant 40 : index
    %c0_58 = arith.constant 0 : index
    %169 = vector.load %arg2[%c0_56, %c40_57, %c0_58] : memref<1x64x19xf32, #tpu.memory_space<vmem>>, vector<1x16x19xf32>
    %170 = vector.shape_cast %169 : vector<1x16x19xf32> to vector<16x19xf32>
    %cst_59 = arith.constant dense<0.000000e+00> : vector<32x2xf32>
    %171 = tpu.matmul %0, %168, %cst_59 {dimension_numbers = #tpu.dot_dimension_numbers<[1], [0], [0], [1], [0, 0, 1, 1], [], []>} : vector<32x16xf32>, vector<16x2xf32>, vector<32x2xf32> -> vector<32x2xf32>
    %cst_60 = arith.constant dense<0.000000e+00> : vector<32x19xf32>
    %172 = tpu.matmul %0, %170, %cst_60 {dimension_numbers = #tpu.dot_dimension_numbers<[1], [0], [0], [1], [0, 0, 1, 1], [], []>} : vector<32x16xf32>, vector<16x19xf32>, vector<32x19xf32> -> vector<32x19xf32>
    %cst_61 = arith.constant dense<0.000000e+00> : vector<32x38xf32>
    %173 = tpu.matmul %171, %1, %cst_61 {dimension_numbers = #tpu.dot_dimension_numbers<[1], [0], [0], [1], [0, 0, 1, 1], [], []>} : vector<32x2xf32>, vector<2x38xf32>, vector<32x38xf32> -> vector<32x38xf32>
    %cst_62 = arith.constant dense<0.000000e+00> : vector<32x38xf32>
    %174 = tpu.matmul %172, %2, %cst_62 {dimension_numbers = #tpu.dot_dimension_numbers<[1], [0], [0], [1], [0, 0, 1, 1], [], []>} : vector<32x19xf32>, vector<19x38xf32>, vector<32x38xf32> -> vector<32x38xf32>
    %175 = vector.extract_strided_slice %171 {offsets = [0, 0], sizes = [16, 2], strides = [1, 1]} : vector<32x2xf32> to vector<16x2xf32>
    %176 = vector.extract_strided_slice %171 {offsets = [16, 0], sizes = [16, 2], strides = [1, 1]} : vector<32x2xf32> to vector<16x2xf32>
    %177 = vector.extract_strided_slice %172 {offsets = [0, 0], sizes = [16, 19], strides = [1, 1]} : vector<32x19xf32> to vector<16x19xf32>
    %178 = vector.extract_strided_slice %172 {offsets = [16, 0], sizes = [16, 19], strides = [1, 1]} : vector<32x19xf32> to vector<16x19xf32>
    %179 = vector.extract_strided_slice %173 {offsets = [0, 0], sizes = [16, 38], strides = [1, 1]} : vector<32x38xf32> to vector<16x38xf32>
    %180 = vector.extract_strided_slice %173 {offsets = [16, 0], sizes = [16, 38], strides = [1, 1]} : vector<32x38xf32> to vector<16x38xf32>
    %181 = vector.extract_strided_slice %174 {offsets = [0, 0], sizes = [16, 38], strides = [1, 1]} : vector<32x38xf32> to vector<16x38xf32>
    %182 = vector.extract_strided_slice %174 {offsets = [16, 0], sizes = [16, 38], strides = [1, 1]} : vector<32x38xf32> to vector<16x38xf32>
    %183 = arith.mulf %175, %175 : vector<16x2xf32>
    %184 = arith.mulf %176, %176 : vector<16x2xf32>
    %185 = arith.addf %183, %184 : vector<16x2xf32>
    %186 = arith.addf %154, %185 : vector<16x2xf32>
    %187 = arith.mulf %177, %177 : vector<16x19xf32>
    %188 = arith.mulf %178, %178 : vector<16x19xf32>
    %189 = arith.addf %187, %188 : vector<16x19xf32>
    %190 = arith.addf %158, %189 : vector<16x19xf32>
    %191 = arith.mulf %179, %181 : vector<16x38xf32>
    %192 = arith.mulf %180, %182 : vector<16x38xf32>
    %193 = arith.addf %191, %192 : vector<16x38xf32>
    %194 = arith.addf %162, %193 : vector<16x38xf32>
    %195 = arith.mulf %179, %182 : vector<16x38xf32>
    %196 = arith.mulf %180, %181 : vector<16x38xf32>
    %197 = arith.subf %195, %196 : vector<16x38xf32>
    %198 = arith.addf %166, %197 : vector<16x38xf32>
    %c0_63 = arith.constant 0 : index
    %c48 = arith.constant 48 : index
    %c0_64 = arith.constant 0 : index
    %199 = vector.load %arg1[%c0_63, %c48, %c0_64] : memref<1x64x2xf32, #tpu.memory_space<vmem>>, vector<1x16x2xf32>
    %200 = vector.shape_cast %199 : vector<1x16x2xf32> to vector<16x2xf32>
    %c0_65 = arith.constant 0 : index
    %c48_66 = arith.constant 48 : index
    %c0_67 = arith.constant 0 : index
    %201 = vector.load %arg2[%c0_65, %c48_66, %c0_67] : memref<1x64x19xf32, #tpu.memory_space<vmem>>, vector<1x16x19xf32>
    %202 = vector.shape_cast %201 : vector<1x16x19xf32> to vector<16x19xf32>
    %cst_68 = arith.constant dense<0.000000e+00> : vector<32x2xf32>
    %203 = tpu.matmul %0, %200, %cst_68 {dimension_numbers = #tpu.dot_dimension_numbers<[1], [0], [0], [1], [0, 0, 1, 1], [], []>} : vector<32x16xf32>, vector<16x2xf32>, vector<32x2xf32> -> vector<32x2xf32>
    %cst_69 = arith.constant dense<0.000000e+00> : vector<32x19xf32>
    %204 = tpu.matmul %0, %202, %cst_69 {dimension_numbers = #tpu.dot_dimension_numbers<[1], [0], [0], [1], [0, 0, 1, 1], [], []>} : vector<32x16xf32>, vector<16x19xf32>, vector<32x19xf32> -> vector<32x19xf32>
    %cst_70 = arith.constant dense<0.000000e+00> : vector<32x38xf32>
    %205 = tpu.matmul %203, %1, %cst_70 {dimension_numbers = #tpu.dot_dimension_numbers<[1], [0], [0], [1], [0, 0, 1, 1], [], []>} : vector<32x2xf32>, vector<2x38xf32>, vector<32x38xf32> -> vector<32x38xf32>
    %cst_71 = arith.constant dense<0.000000e+00> : vector<32x38xf32>
    %206 = tpu.matmul %204, %2, %cst_71 {dimension_numbers = #tpu.dot_dimension_numbers<[1], [0], [0], [1], [0, 0, 1, 1], [], []>} : vector<32x19xf32>, vector<19x38xf32>, vector<32x38xf32> -> vector<32x38xf32>
    %207 = vector.extract_strided_slice %203 {offsets = [0, 0], sizes = [16, 2], strides = [1, 1]} : vector<32x2xf32> to vector<16x2xf32>
    %208 = vector.extract_strided_slice %203 {offsets = [16, 0], sizes = [16, 2], strides = [1, 1]} : vector<32x2xf32> to vector<16x2xf32>
    %209 = vector.extract_strided_slice %204 {offsets = [0, 0], sizes = [16, 19], strides = [1, 1]} : vector<32x19xf32> to vector<16x19xf32>
    %210 = vector.extract_strided_slice %204 {offsets = [16, 0], sizes = [16, 19], strides = [1, 1]} : vector<32x19xf32> to vector<16x19xf32>
    %211 = vector.extract_strided_slice %205 {offsets = [0, 0], sizes = [16, 38], strides = [1, 1]} : vector<32x38xf32> to vector<16x38xf32>
    %212 = vector.extract_strided_slice %205 {offsets = [16, 0], sizes = [16, 38], strides = [1, 1]} : vector<32x38xf32> to vector<16x38xf32>
    %213 = vector.extract_strided_slice %206 {offsets = [0, 0], sizes = [16, 38], strides = [1, 1]} : vector<32x38xf32> to vector<16x38xf32>
    %214 = vector.extract_strided_slice %206 {offsets = [16, 0], sizes = [16, 38], strides = [1, 1]} : vector<32x38xf32> to vector<16x38xf32>
    %215 = arith.mulf %207, %207 : vector<16x2xf32>
    %216 = arith.mulf %208, %208 : vector<16x2xf32>
    %217 = arith.addf %215, %216 : vector<16x2xf32>
    %218 = arith.addf %186, %217 : vector<16x2xf32>
    %219 = arith.mulf %209, %209 : vector<16x19xf32>
    %220 = arith.mulf %210, %210 : vector<16x19xf32>
    %221 = arith.addf %219, %220 : vector<16x19xf32>
    %222 = arith.addf %190, %221 : vector<16x19xf32>
    %223 = arith.mulf %211, %213 : vector<16x38xf32>
    %224 = arith.mulf %212, %214 : vector<16x38xf32>
    %225 = arith.addf %223, %224 : vector<16x38xf32>
    %226 = arith.addf %194, %225 : vector<16x38xf32>
    %227 = arith.mulf %211, %214 : vector<16x38xf32>
    %228 = arith.mulf %212, %213 : vector<16x38xf32>
    %229 = arith.subf %227, %228 : vector<16x38xf32>
    %230 = arith.addf %198, %229 : vector<16x38xf32>
    %231 = arith.mulf %226, %226 : vector<16x38xf32>
    %232 = arith.mulf %230, %230 : vector<16x38xf32>
    %233 = arith.addf %231, %232 : vector<16x38xf32>
    %cst_72 = arith.constant dense<0.000000e+00> : vector<16x38xf32>
    %234 = tpu.matmul %218, %1, %cst_72 {dimension_numbers = #tpu.dot_dimension_numbers<[1], [0], [0], [1], [0, 0, 1, 1], [], []>} : vector<16x2xf32>, vector<2x38xf32>, vector<16x38xf32> -> vector<16x38xf32>
    %cst_73 = arith.constant dense<0.000000e+00> : vector<16x38xf32>
    %235 = tpu.matmul %222, %2, %cst_73 {dimension_numbers = #tpu.dot_dimension_numbers<[1], [0], [0], [1], [0, 0, 1, 1], [], []>} : vector<16x19xf32>, vector<19x38xf32>, vector<16x38xf32> -> vector<16x38xf32>
    %236 = arith.mulf %234, %235 : vector<16x38xf32>
    %cst_74 = arith.constant 4.900000e-09 : f32
    %237 = vector.broadcast %cst_74 : f32 to vector<16x38xf32>
    %238 = arith.addf %236, %237 : vector<16x38xf32>
    %239 = arith.divf %233, %238 : vector<16x38xf32>
    %cst_75 = arith.constant dense<0.000000e+00> : vector<38xf32>
    %240 = vector.multi_reduction <add>, %239, %cst_75 [0] : vector<16x38xf32> to vector<38xf32>
    %241 = vector.shape_cast %240 : vector<38xf32> to vector<1x38xf32>
    %cst_76 = arith.constant 0.111111112 : f32
    %242 = vector.broadcast %cst_76 : f32 to vector<1x38xf32>
    %243 = arith.mulf %241, %242 : vector<1x38xf32>
    %c0_77 = arith.constant 0 : index
    %c0_78 = arith.constant 0 : index
    %c0_79 = arith.constant 0 : index
    %244 = vector.load %arg6[%c0_77, %c0_78, %c0_79] : memref<1x1x38xf32, #tpu.memory_space<vmem>>, vector<1x1x38xf32>
    %245 = vector.shape_cast %244 : vector<1x1x38xf32> to vector<1x38xf32>
    %246 = vector.shape_cast %243 : vector<1x38xf32> to vector<1x1x38xf32>
    tpu.vector_store %arg6[%c0_77, %c0_78, %c0_79], %246 {strides = array<i32>} : memref<1x1x38xf32, #tpu.memory_space<vmem>>, vector<1x1x38xf32>,
    return
  }
  func.func @transform_0(%arg0: i32) -> (i32, i32, i32) {
    %c0_i32 = arith.constant 0 : i32
    %c0_i32_0 = arith.constant 0 : i32
    %c0_i32_1 = arith.constant 0 : i32
    return %arg0, %c0_i32, %c0_i32_0 : i32, i32, i32
  }
  func.func @transform_1(%arg0: i32) -> (i32, i32, i32) {
    %c0_i32 = arith.constant 0 : i32
    %c0_i32_0 = arith.constant 0 : i32
    %c0_i32_1 = arith.constant 0 : i32
    return %arg0, %c0_i32, %c0_i32_0 : i32, i32, i32
  }
  func.func @transform_2(%arg0: i32) -> (i32, i32) {
    %c0_i32 = arith.constant 0 : i32
    %c0_i32_0 = arith.constant 0 : i32
    %c0_i32_1 = arith.constant 0 : i32
    return %c0_i32, %c0_i32_0 : i32, i32
  }
  func.func @transform_3(%arg0: i32) -> (i32, i32) {
    %c0_i32 = arith.constant 0 : i32
    %c0_i32_0 = arith.constant 0 : i32
    %c0_i32_1 = arith.constant 0 : i32
    return %c0_i32, %c0_i32_0 : i32, i32
  }
  func.func @transform_4(%arg0: i32) -> (i32, i32) {
    %c0_i32 = arith.constant 0 : i32
    %c0_i32_0 = arith.constant 0 : i32
    %c0_i32_1 = arith.constant 0 : i32
    return %c0_i32, %c0_i32_0 : i32, i32
  }
  func.func @transform_5(%arg0: i32) -> (i32, i32, i32) {
    %c0_i32 = arith.constant 0 : i32
    %c0_i32_0 = arith.constant 0 : i32
    %c0_i32_1 = arith.constant 0 : i32
    return %arg0, %c0_i32, %c0_i32_0 : i32, i32, i32
  }
}

</mosaic_0001>

<bundles_post_ra>
// kernel: tpu_custom_call.1
= control target key start
LH: loop header
LB: loop body
LE: loop exit
PB: predicated region body
PF: predicated region fallthrough
CT: control target
= control target key end

     0   :  { %10 = vsyncpa [#allocation3], 0  ;;  %s4772_s0 = inlined_call_operand.vmem [shape: f32[2,64,2], index: 0, kind: input, shape index: {}]   ;;  %s4773_s1 = inlined_call_operand.vmem [shape: f32[2,64,19], index: 1, kind: input, shape index: {}]   ;;  %s4774_s2 = inlined_call_operand.vmem [shape: f32[32,16], index: 2, kind: input, shape index: {}]   ;;  %s4775_s3 = inlined_call_operand.vmem [shape: f32[2,38], index: 3, kind: input, shape index: {}]   ;;  %s4776_s4 = inlined_call_operand.vmem [shape: f32[19,38], index: 4, kind: input, shape index: {}]   ;;  %s4777_s5 = inlined_call_operand.hbm [shape: f32[2,1,38], index: 5, kind: output, shape index: {}]  }
   0x1   :  { %12 = vsyncpa [#allocation3 + $0x1], 0  ;;  %s4183_s18 = smov 0   ;;  %s4185_s19 = smov 0  }
   0x2   :  { %s4187_s20 = smov 0   ;;  %s4189_s21 = smov 0  }
   0x3 LB: > { %s4204_s22 = sadd.s32 4294967295, %s4150_s21   ;;  %s3342_s23 = sadd.s32 4294967294, %s4150_s21   ;;  %s4150_s21 = sphi %s4189_s21, %s4783_s21   ;;  %s4146_s20 = sphi %s4187_s20, %s4782_s20   ;;  %s4142_s19 = sphi %s4185_s19, %s4781_s19   ;;  %s4138_s18 = sphi %s4183_s18, %s4780_s18  }
   0x4   : > { %s4208_s24 = sadd.s32 1, %s4150_s21   ;;  %s140_s25 = sadd.s32 1, %s4146_s20 }
   0x5   : > { %s137_s26 = ssub.s32 %s4150_s21, %s4208_s24  ;;  %p150_p0 = scmp.ne.s32.totalorder %s4146_s20, %s4142_s19 }
   0x6   : > { %p138_p1 = scmp.eq.s32.totalorder %s137_s26, 0  ;;  %p151_p2 = scmp.eq.s32.totalorder %s4204_s22, 1 }
   0x7   : > { %p156_p3 = scmp.ne.s32.totalorder %s4142_s19, %s4138_s18  ;;  %p157_p4 = scmp.eq.s32.totalorder %s3342_s23, 1 }
   0x8   : > { %s4219_s27 = scalar_select %p138_p1, %s4146_s20, %s140_s25  }
   0x9   : > { %p4221_p5 = por %p151_p2, %p150_p0  ;;  %p4225_p6 = por %p157_p4, %p156_p3 }
   0xa   : > { %p3345_p7 = scmp.ge.s32.totalorder %s4150_s21, 1  ;;  %p200_p8 = scmp.lt.s32.totalorder %s4150_s21, 3 }
   0xc   : > { %p201_p9 = pnand %p3345_p7, %p200_p8 }
   0xd   : > { %p232_p10 = scmp.lt.s32.totalorder (!%p201_p9), %s4204_s22, 1  ;;  %v4235_v0 = vld [vmem:[%s4774_s2] sm:$0xff] (!%p201_p9)  ;;  %vm254_vm0 = vcmask (!%p201_p9), 130048   ;;  %v248_v2 = vld [vmem:[%s4776_s4 + $0x8] sm:$0xff] (!%p201_p9)  ;;  %vm450_vm1 = vcmask (!%p201_p9), 1041408   ;;  %v4277_v12 = vld [vmem:[%s4774_s2 + $0x10] sm:$0xff] (!%p201_p9) }
   0xe   : > { %204 = sbr.rel (%p201_p9) target bundleno = 1850 (0x73a), region = 40  ;;  %3667 = vmatprep.mubr.msk.f32.mxu0 (!%p201_p9), %vm254_vm0, %v4235_v0  ;;  %3677 = vmatprep.mubr.msk.f32.mxu1 (!%p201_p9), %vm254_vm0, %v4235_v0  ;;  %v247_v1 = vld [vmem:[%s4776_s4] sm:$0xff] (!%p201_p9)  ;;  %v4272_v11 = vld [vmem:[%s4774_s2 + $0x8] sm:$0xff] (!%p201_p9)  ;;  %v4291_v13 = vld [vmem:[%s4774_s2 + $0x18] sm:$0xff] (!%p201_p9)  ;;  %vm552_vm2 = vcmask (!%p201_p9), 1042432   ;;  %vm437_vm3 = vcmask (!%p201_p9), 15360  }
   0xf   : > { %v4265_v9 = vld [vmem:[%s4775_s3] sm:$0x3] (!%p201_p9)  ;;  %v4267_v10 = vpack.c.bf16 (!%p201_p9), %v248_v2, %v247_v1  ;;  %v4296_v14 = vld [vmem:[%s4776_s4 + $0x10] sm:$0x7] (!%p201_p9)  ;;  %vm539_vm4 = vcmask (!%p201_p9), 154624   ;;  %vm3249_vm5 = vcmask (!%p201_p9), 310272  }
  0x10   : > { %vm3260_vm6 = vcmask (!%p201_p9), 303104  }
  0x15   : > { %s233_s7 = scalar_select %p232_p10, %s4204_s22, 1 }
  0x17   : > { %s3485_s8 = sshll.u32 %s233_s7, 6 }
  0x18   : > { %s4245_s11 = scalar_lea.vmem %s4772_s0, %s3485_s8  ;;  %s4250_s14 = scalar_lea.vmem %s4773_s1, %s3485_s8 }
  0x19   : > { %v250_v3 = vld [vmem:[%s4245_s11] sm:$0xff]  ;;  %v251_v4 = vld [vmem:[%s4245_s11 + $0x8] sm:$0xff]  ;;  %v674_v15 = vld [vmem:[%s4245_s11 + $0x10] sm:$0xff] }
  0x1a   : > { %v252_v5 = vld [vmem:[%s4250_s14] sm:$0xff]  ;;  %v3957_v6 = vpack.c.bf16 %v251_v4, %v250_v3  ;;  %v253_v7 = vld [vmem:[%s4250_s14 + $0x8] sm:$0xff]  ;;  %v676_v16 = vld [vmem:[%s4250_s14 + $0x10] sm:$0xff]  ;;  %v3969_v17 = vpack.c.bf16 %v674_v15, %v251_v4 }
  0x1b   : > { %v3961_v8 = vpack.c.bf16 %v253_v7, %v252_v5  ;;  %v3973_v18 = vpack.c.bf16 %v676_v16, %v253_v7  ;;  %v4356_v39 = vld [vmem:[%s4245_s11 + $0x18] sm:$0xff] }
  0x1c   : > { %3958 = vmatprep.subr.bf16.mxu0 %v3957_v6  ;;  %v4359_v40 = vld [vmem:[%s4250_s14 + $0x18] sm:$0xff]  ;;  %v3981_v41 = vpack.c.bf16 %v4356_v39, %v674_v15 }
  0x1d   : > { %3962 = vmatprep.subr.bf16.mxu1 %v3961_v8  ;;  %3960 = vmatpush3.bf16.msra.mxu0 %v3957_v6  ;;  %v3985_v42 = vpack.c.bf16 %v4359_v40, %v676_v16 }
  0x1e   : > { %3964 = vmatpush3.bf16.msra.mxu1 %v3961_v8  ;;  %3683 = vmatprep.subr.msk.mxu0 %vm450_vm1, %v4265_v9 }
  0x1f   : > { %3966 = vmatprep.subr.bf16.mxu1 %v4267_v10 }
  0x20   : > { %3668 = vmatmul.mubr.msk.f32.vlgmr.msra.gmra.mrb[0].mxu0 %vm254_vm0, %v4272_v11 }
  0x21   : > { %3678 = vmatmul.mubr.msk.f32.vlgmr.msra.gmra.mrb[0].mxu1 %vm254_vm0, %v4272_v11  ;;  %3670 = vmatprep.mubr.msk.f32.mxu0 %vm254_vm0, %v4277_v12 }
  0x22   : > { %3680 = vmatprep.mubr.msk.f32.mxu1 %vm254_vm0, %v4277_v12  ;;  %3684 = vmatpush3.msk.msra.mxu0 %vm450_vm1, %v4265_v9 }
  0x23   : > { %3968 = vmatpush3.bf16.msra.mxu1 %v4267_v10  ;;  %3970 = vmatprep.subr.bf16.mxu0 %v3969_v17 }
  0x24   : > { %3671 = vmatmul.mubr.msk.f32.gmra.mrb[2].mxu0 %vm254_vm0, %v4291_v13  ;;  %3695 = vmatprep.subr.msk.mxu1 %vm552_vm2, %v4296_v14 }
  0x25   : > { %3681 = vmatmul.mubr.msk.f32.gmra.mrb[2].mxu1 %vm254_vm0, %v4291_v13 }
  0x27   : > { %3696 = vmatpush3.msk.msra.mxu1 %vm552_vm2, %v4296_v14 }
  0x28   : > { %3974 = vmatprep.subr.bf16.mxu1 %v3973_v18 }
  0xf3   : > { %v3669_v19 = vpop.f32.mrb[0].mxu0 }
  0xf4   : > { %v3679_v20 = vpop.f32.mrb[0].mxu1  ;;  %v333_v21 = vpop.f32.mrb[1].mxu0  ;;  %v642_v24 = vmul.f32 %v3669_v19, %v3669_v19 }
  0xf5   : > { %v418_v22 = vpop.f32.mrb[1].mxu1  ;;  %3685 = vmatprep.mubr.msk.f32.mxu0 %vm437_vm3, %v333_v21  ;;  %v650_v25 = vmul.f32 %v3679_v20, %v3679_v20  ;;  %v641_v29 = vmul.f32 %v333_v21, %v333_v21 }
  0xf6   : > { %3697 = vmatprep.mubr.msk.f32.mxu1 %vm539_vm4, %v418_v22  ;;  %3686 = vmatmul.mubr.msk.f32.vlgmr.msra.gmra.mrb[4].mxu0 %vm437_vm3, %v3669_v19  ;;  %v649_v33 = vmul.f32 %v418_v22, %v418_v22 }
  0xf7   : > { %3698 = vmatmul.mubr.msk.f32.vlgmr.msra.gmra.mrb[4].mxu1 %vm539_vm4, %v3679_v20  ;;  %3972 = vmatpush3.bf16.msra.mxu0 %v3969_v17  ;;  %v3672_v23 = vpop.f32.mrb[2].mxu0 }
  0xf8   : > { %3976 = vmatpush3.bf16.msra.mxu1 %v3973_v18  ;;  %v644_v26 = vmul.f32 %v3672_v23, %v3672_v23  ;;  %v3682_v27 = vpop.f32.mrb[2].mxu1  ;;  %v343_v28 = vpop.f32.mrb[3].mxu0  ;;  %3723 = vmatprep.subr.msk.mxu0 %vm450_vm1, %v4265_v9 }
  0xf9   : > { %v652_v30 = vmul.f32 %v3682_v27, %v3682_v27  ;;  %v643_v31 = vmul.f32 %v343_v28, %v343_v28  ;;  %v428_v32 = vpop.f32.mrb[3].mxu1  ;;  %3688 = vmatprep.mubr.msk.f32.mxu0 %vm437_vm3, %v343_v28  ;;  %3978 = vmatprep.subr.bf16.mxu1 %v4267_v10 }
  0xfa   : > { %v4321_v34 = vadd.f32 %v644_v26, %v642_v24  ;;  %v651_v35 = vmul.f32 %v428_v32, %v428_v32  ;;  %3700 = vmatprep.mubr.msk.f32.mxu1 %vm539_vm4, %v428_v32  ;;  %3689 = vmatmul.mubr.msk.f32.gmra.mrb[6].mxu0 %vm437_vm3, %v3672_v23 }
  0xfb   : > { %v4325_v36 = vadd.f32 %v652_v30, %v650_v25  ;;  %v4327_v37 = vadd.f32 %v643_v31, %v641_v29  ;;  %3701 = vmatmul.mubr.msk.f32.gmra.mrb[6].mxu1 %vm539_vm4, %v3682_v27  ;;  %3707 = vmatprep.mubr.msk.f32.mxu0 %vm254_vm0, %v4235_v0  ;;  %v4426_v30 = vld [vmem:[%s4245_s11 + $0x20] sm:$0xff] }
  0xfc   : > { %v4332_v38 = vadd.f32 %v651_v35, %v649_v33  ;;  %3717 = vmatprep.mubr.msk.f32.mxu1 %vm254_vm0, %v4235_v0  ;;  %v4429_v31 = vld [vmem:[%s4250_s14 + $0x20] sm:$0xff]  ;;  %v3993_v32 = vpack.c.bf16 %v4426_v30, %v4356_v39 }
  0xfd   : > { %v3997_v33 = vpack.c.bf16 %v4429_v31, %v4359_v40 }
  0xfe   : > { %3708 = vmatmul.mubr.msk.f32.vlgmr.msra.gmra.mrb[8].mxu0 %vm254_vm0, %v4272_v11 }
  0xff   : > { %3718 = vmatmul.mubr.msk.f32.vlgmr.msra.gmra.mrb[8].mxu1 %vm254_vm0, %v4272_v11  ;;  %3710 = vmatprep.mubr.msk.f32.mxu0 %vm254_vm0, %v4277_v12 }
 0x100   : > { %3720 = vmatprep.mubr.msk.f32.mxu1 %vm254_vm0, %v4277_v12  ;;  %3724 = vmatpush3.msk.msra.mxu0 %vm450_vm1, %v4265_v9 }
 0x101   : > { %3980 = vmatpush3.bf16.msra.mxu1 %v4267_v10  ;;  %3982 = vmatprep.subr.bf16.mxu0 %v3981_v41 }
 0x102   : > { %3711 = vmatmul.mubr.msk.f32.gmra.mrb[10].mxu0 %vm254_vm0, %v4291_v13  ;;  %3735 = vmatprep.subr.msk.mxu1 %vm552_vm2, %v4296_v14 }
 0x103   : > { %3721 = vmatmul.mubr.msk.f32.gmra.mrb[10].mxu1 %vm254_vm0, %v4291_v13 }
 0x105   : > { %3736 = vmatpush3.msk.msra.mxu1 %vm552_vm2, %v4296_v14 }
 0x106   : > { %3986 = vmatprep.subr.bf16.mxu1 %v3985_v42 }
 0x1c9   : > { %v3687_v43 = vpop.f32.mrb[4].mxu0 }
 0x1ca   : > { %v3699_v44 = vpop.f32.mrb[4].mxu1  ;;  %v520_v45 = vpop.f32.mrb[5].mxu0 }
 0x1cb   : > { %v658_v46 = vmul.f32 %v3699_v44, %v3687_v43  ;;  %v622_v47 = vpop.f32.mrb[5].mxu1 }
 0x1cc   : > { %v657_v48 = vmul.f32 %v622_v47, %v520_v45 }
 0x1cd   : > { %v3690_v49 = vpop.f32.mrb[6].mxu0 }
 0x1ce   : > { %v4363_v50 = vmul.f32 %v3699_v44, %v3690_v49  ;;  %v3702_v51 = vpop.f32.mrb[6].mxu1  ;;  %v530_v52 = vpop.f32.mrb[7].mxu0 }
 0x1cf   : > { %v660_v53 = vmul.f32 %v3702_v51, %v3690_v49  ;;  %v4365_v54 = vmul.f32 %v3702_v51, %v3687_v43  ;;  %v4367_v55 = vmul.f32 %v622_v47, %v530_v52  ;;  %v632_v56 = vpop.f32.mrb[7].mxu1 }
 0x1d0   : > { %v659_v57 = vmul.f32 %v632_v56, %v530_v52  ;;  %v4369_v58 = vmul.f32 %v632_v56, %v520_v45 }
 0x1d1   : > { %v4371_v59 = vadd.f32 %v660_v53, %v658_v46  ;;  %v670_v60 = vsub.f32 %v4365_v54, %v4363_v50  ;;  %v3709_v61 = vpop.f32.mrb[8].mxu0 }
 0x1d2   : > { %v4375_v62 = vadd.f32 %v659_v57, %v657_v48  ;;  %v669_v63 = vsub.f32 %v4369_v58, %v4367_v55  ;;  %v3719_v1 = vpop.f32.mrb[8].mxu1  ;;  %v743_v2 = vpop.f32.mrb[9].mxu0  ;;  %v1042_v5 = vmul.f32 %v3709_v61, %v3709_v61 }
 0x1d3   : > { %v828_v3 = vpop.f32.mrb[9].mxu1  ;;  %3725 = vmatprep.mubr.msk.f32.mxu0 %vm437_vm3, %v743_v2  ;;  %v1050_v6 = vmul.f32 %v3719_v1, %v3719_v1  ;;  %v1041_v16 = vmul.f32 %v743_v2, %v743_v2 }
 0x1d4   : > { %3737 = vmatprep.mubr.msk.f32.mxu1 %vm539_vm4, %v828_v3  ;;  %3726 = vmatmul.mubr.msk.f32.vlgmr.msra.gmra.mrb[12].mxu0 %vm437_vm3, %v3709_v61  ;;  %v1049_v20 = vmul.f32 %v828_v3, %v828_v3 }
 0x1d5   : > { %3738 = vmatmul.mubr.msk.f32.vlgmr.msra.gmra.mrb[12].mxu1 %vm539_vm4, %v3719_v1  ;;  %3984 = vmatpush3.bf16.msra.mxu0 %v3981_v41  ;;  %v3712_v4 = vpop.f32.mrb[10].mxu0 }
 0x1d6   : > { %3988 = vmatpush3.bf16.msra.mxu1 %v3985_v42  ;;  %v1044_v7 = vmul.f32 %v3712_v4, %v3712_v4  ;;  %v3722_v8 = vpop.f32.mrb[10].mxu1  ;;  %v753_v15 = vpop.f32.mrb[11].mxu0  ;;  %3763 = vmatprep.subr.msk.mxu0 %vm450_vm1, %v4265_v9 }
 0x1d7   : > { %v1052_v17 = vmul.f32 %v3722_v8, %v3722_v8  ;;  %v1043_v18 = vmul.f32 %v753_v15, %v753_v15  ;;  %v838_v19 = vpop.f32.mrb[11].mxu1  ;;  %3728 = vmatprep.mubr.msk.f32.mxu0 %vm437_vm3, %v753_v15  ;;  %3990 = vmatprep.subr.bf16.mxu1 %v4267_v10 }
 0x1d8   : > { %v1046_v21 = vadd.f32 %v1044_v7, %v1042_v5  ;;  %v1051_v22 = vmul.f32 %v838_v19, %v838_v19  ;;  %3740 = vmatprep.mubr.msk.f32.mxu1 %vm539_vm4, %v838_v19  ;;  %3729 = vmatmul.mubr.msk.f32.gmra.mrb[14].mxu0 %vm437_vm3, %v3712_v4 }
 0x1d9   : > { %v1054_v23 = vadd.f32 %v1052_v17, %v1050_v6  ;;  %v1045_v24 = vadd.f32 %v1043_v18, %v1041_v16  ;;  %3741 = vmatmul.mubr.msk.f32.gmra.mrb[14].mxu1 %vm539_vm4, %v3722_v8  ;;  %3747 = vmatprep.mubr.msk.f32.mxu0 %vm254_vm0, %v4235_v0 }
 0x1da   : > { %v4393_v25 = vadd.f32 %v1046_v21, %v4321_v34  ;;  %v1053_v26 = vadd.f32 %v1051_v22, %v1049_v20  ;;  %3757 = vmatprep.mubr.msk.f32.mxu1 %vm254_vm0, %v4235_v0 }
 0x1db   : > { %v4398_v27 = vadd.f32 %v1054_v23, %v4325_v36  ;;  %v4401_v28 = vadd.f32 %v1045_v24, %v4327_v37 }
 0x1dc   : > { %v4404_v29 = vadd.f32 %v1053_v26, %v4332_v38  ;;  %3748 = vmatmul.mubr.msk.f32.vlgmr.msra.gmra.mrb[16].mxu0 %vm254_vm0, %v4272_v11  ;;  %v4501_v26 = vld [vmem:[%s4250_s14 + $0x28] sm:$0xff] }
 0x1dd   : > { %3758 = vmatmul.mubr.msk.f32.vlgmr.msra.gmra.mrb[16].mxu1 %vm254_vm0, %v4272_v11  ;;  %3750 = vmatprep.mubr.msk.f32.mxu0 %vm254_vm0, %v4277_v12 }
 0x1de   : > { %3760 = vmatprep.mubr.msk.f32.mxu1 %vm254_vm0, %v4277_v12  ;;  %3764 = vmatpush3.msk.msra.mxu0 %vm450_vm1, %v4265_v9 }
 0x1df   : > { %3992 = vmatpush3.bf16.msra.mxu1 %v4267_v10  ;;  %3994 = vmatprep.subr.bf16.mxu0 %v3993_v32 }
 0x1e0   : > { %3751 = vmatmul.mubr.msk.f32.gmra.mrb[18].mxu0 %vm254_vm0, %v4291_v13  ;;  %3775 = vmatprep.subr.msk.mxu1 %vm552_vm2, %v4296_v14 }
 0x1e1   : > { %3761 = vmatmul.mubr.msk.f32.gmra.mrb[18].mxu1 %vm254_vm0, %v4291_v13 }
 0x1e3   : > { %3776 = vmatpush3.msk.msra.mxu1 %vm552_vm2, %v4296_v14 }
 0x1e4   : > { %3998 = vmatprep.subr.bf16.mxu1 %v3997_v33 }
 0x2a7   : > { %v3727_v34 = vpop.f32.mrb[12].mxu0 }
 0x2a8   : > { %v3739_v35 = vpop.f32.mrb[12].mxu1  ;;  %v925_v36 = vpop.f32.mrb[13].mxu0 }
 0x2a9   : > { %v1058_v37 = vmul.f32 %v3739_v35, %v3727_v34  ;;  %v1022_v38 = vpop.f32.mrb[13].mxu1 }
 0x2aa   : > { %v1057_v41 = vmul.f32 %v1022_v38, %v925_v36 }
 0x2ab   : > { %v3730_v42 = vpop.f32.mrb[14].mxu0 }
 0x2ac   : > { %v1068_v43 = vmul.f32 %v3739_v35, %v3730_v42  ;;  %v3742_v44 = vpop.f32.mrb[14].mxu1  ;;  %v935_v45 = vpop.f32.mrb[15].mxu0 }
 0x2ad   : > { %v1060_v46 = vmul.f32 %v3742_v44, %v3730_v42  ;;  %v1066_v47 = vmul.f32 %v3742_v44, %v3727_v34  ;;  %v1067_v48 = vmul.f32 %v1022_v38, %v935_v45  ;;  %v1032_v49 = vpop.f32.mrb[15].mxu1 }
 0x2ae   : > { %v1059_v39 = vmul.f32 %v1032_v49, %v935_v45  ;;  %v1065_v51 = vmul.f32 %v1032_v49, %v925_v36 }
 0x2af   : > { %v1062_v52 = vadd.f32 %v1060_v46, %v1058_v37  ;;  %v1070_v40 = vsub.f32 %v1066_v47, %v1068_v43  ;;  %v3749_v53 = vpop.f32.mrb[16].mxu0 }
 0x2b0   : > { %v1061_v56 = vadd.f32 %v1059_v39, %v1057_v41  ;;  %v1069_v57 = vsub.f32 %v1065_v51, %v1067_v48  ;;  %v3759_v61 = vpop.f32.mrb[16].mxu1  ;;  %v1143_v1 = vpop.f32.mrb[17].mxu0  ;;  %v1442_v54 = vmul.f32 %v3749_v53, %v3749_v53 }
 0x2b1   : > { %v4436_v2 = vadd.f32 %v1062_v52, %v4371_v59  ;;  %v4441_v3 = vadd.f32 %v1070_v40, %v670_v60  ;;  %v1228_v4 = vpop.f32.mrb[17].mxu1  ;;  %3765 = vmatprep.mubr.msk.f32.mxu0 %vm437_vm3, %v1143_v1  ;;  %v1450_v59 = vmul.f32 %v3759_v61, %v3759_v61  ;;  %v1441_v55 = vmul.f32 %v1143_v1, %v1143_v1 }
 0x2b2   : > { %v4445_v5 = vadd.f32 %v1061_v56, %v4375_v62  ;;  %v4450_v6 = vadd.f32 %v1069_v57, %v669_v63  ;;  %3777 = vmatprep.mubr.msk.f32.mxu1 %vm539_vm4, %v1228_v4  ;;  %3766 = vmatmul.mubr.msk.f32.vlgmr.msra.gmra.mrb[20].mxu0 %vm437_vm3, %v3749_v53  ;;  %v1449_v15 = vmul.f32 %v1228_v4, %v1228_v4 }
 0x2b3   : > { %3778 = vmatmul.mubr.msk.f32.vlgmr.msra.gmra.mrb[20].mxu1 %vm539_vm4, %v3759_v61  ;;  %3996 = vmatpush3.bf16.msra.mxu0 %v3993_v32  ;;  %v3752_v50 = vpop.f32.mrb[18].mxu0 }
 0x2b4   : > { %4000 = vmatpush3.bf16.msra.mxu1 %v3997_v33  ;;  %v1444_v60 = vmul.f32 %v3752_v50, %v3752_v50  ;;  %v3762_v7 = vpop.f32.mrb[18].mxu1  ;;  %v1153_v62 = vpop.f32.mrb[19].mxu0  ;;  %3803 = vmatprep.subr.msk.mxu0 %vm450_vm1, %v4265_v9 }
 0x2b5   : > { %v1452_v58 = vmul.f32 %v3762_v7, %v3762_v7  ;;  %v1443_v63 = vmul.f32 %v1153_v62, %v1153_v62  ;;  %v1238_v8 = vpop.f32.mrb[19].mxu1  ;;  %3768 = vmatprep.mubr.msk.f32.mxu0 %vm437_vm3, %v1153_v62  ;;  %4002 = vmatprep.subr.bf16.mxu1 %v4267_v10 }
 0x2b6   : > { %v1446_v16 = vadd.f32 %v1444_v60, %v1442_v54  ;;  %v1451_v17 = vmul.f32 %v1238_v8, %v1238_v8  ;;  %3780 = vmatprep.mubr.msk.f32.mxu1 %vm539_vm4, %v1238_v8  ;;  %3769 = vmatmul.mubr.msk.f32.gmra.mrb[22].mxu0 %vm437_vm3, %v3752_v50 }
 0x2b7   : > { %v1454_v18 = vadd.f32 %v1452_v58, %v1450_v59  ;;  %v1445_v19 = vadd.f32 %v1443_v63, %v1441_v55  ;;  %3781 = vmatmul.mubr.msk.f32.gmra.mrb[22].mxu1 %vm539_vm4, %v3762_v7  ;;  %3787 = vmatprep.mubr.msk.f32.mxu0 %vm254_vm0, %v4235_v0 }
 0x2b8   : > { %v4465_v20 = vadd.f32 %v1446_v16, %v4393_v25  ;;  %v1453_v21 = vadd.f32 %v1451_v17, %v1449_v15  ;;  %3797 = vmatprep.mubr.msk.f32.mxu1 %vm254_vm0, %v4235_v0  ;;  %v4498_v25 = vld [vmem:[%s4245_s11 + $0x28] sm:$0xff] }
 0x2b9   : > { %v4470_v22 = vadd.f32 %v1454_v18, %v4398_v27  ;;  %v4473_v23 = vadd.f32 %v1445_v19, %v4401_v28  ;;  %v4005_v27 = vpack.c.bf16 %v4498_v25, %v4426_v30  ;;  %v4009_v28 = vpack.c.bf16 %v4501_v26, %v4429_v31 }
 0x2ba   : > { %v4476_v24 = vadd.f32 %v1453_v21, %v4404_v29  ;;  %3788 = vmatmul.mubr.msk.f32.vlgmr.msra.gmra.mrb[24].mxu0 %vm254_vm0, %v4272_v11  ;;  %v4569_v21 = vld [vmem:[%s4250_s14 + $0x30] sm:$0xff] }
 0x2bb   : > { %3798 = vmatmul.mubr.msk.f32.vlgmr.msra.gmra.mrb[24].mxu1 %vm254_vm0, %v4272_v11  ;;  %3790 = vmatprep.mubr.msk.f32.mxu0 %vm254_vm0, %v4277_v12 }
 0x2bc   : > { %3800 = vmatprep.mubr.msk.f32.mxu1 %vm254_vm0, %v4277_v12  ;;  %3804 = vmatpush3.msk.msra.mxu0 %vm450_vm1, %v4265_v9 }
 0x2bd   : > { %4004 = vmatpush3.bf16.msra.mxu1 %v4267_v10  ;;  %4006 = vmatprep.subr.bf16.mxu0 %v4005_v27 }
 0x2be   : > { %3791 = vmatmul.mubr.msk.f32.gmra.mrb[26].mxu0 %vm254_vm0, %v4291_v13  ;;  %3815 = vmatprep.subr.msk.mxu1 %vm552_vm2, %v4296_v14 }
 0x2bf   : > { %3801 = vmatmul.mubr.msk.f32.gmra.mrb[26].mxu1 %vm254_vm0, %v4291_v13 }
 0x2c1   : > { %3816 = vmatpush3.msk.msra.mxu1 %vm552_vm2, %v4296_v14 }
 0x2c2   : > { %4010 = vmatprep.subr.bf16.mxu1 %v4009_v28 }
 0x385   : > { %v3767_v29 = vpop.f32.mrb[20].mxu0 }
 0x386   : > { %v3779_v32 = vpop.f32.mrb[20].mxu1  ;;  %v1325_v33 = vpop.f32.mrb[21].mxu0 }
 0x387   : > { %v1458_v34 = vmul.f32 %v3779_v32, %v3767_v29  ;;  %v1422_v35 = vpop.f32.mrb[21].mxu1 }
 0x388   : > { %v1457_v36 = vmul.f32 %v1422_v35, %v1325_v33 }
 0x389   : > { %v3770_v37 = vpop.f32.mrb[22].mxu0 }
 0x38a   : > { %v1468_v38 = vmul.f32 %v3779_v32, %v3770_v37  ;;  %v3782_v41 = vpop.f32.mrb[22].mxu1  ;;  %v1335_v42 = vpop.f32.mrb[23].mxu0 }
 0x38b   : > { %v1460_v43 = vmul.f32 %v3782_v41, %v3770_v37  ;;  %v1466_v44 = vmul.f32 %v3782_v41, %v3767_v29  ;;  %v1467_v45 = vmul.f32 %v1422_v35, %v1335_v42  ;;  %v1432_v46 = vpop.f32.mrb[23].mxu1 }
 0x38c   : > { %v1459_v30 = vmul.f32 %v1432_v46, %v1335_v42  ;;  %v1465_v47 = vmul.f32 %v1432_v46, %v1325_v33 }
 0x38d   : > { %v1462_v48 = vadd.f32 %v1460_v43, %v1458_v34  ;;  %v1470_v31 = vsub.f32 %v1466_v44, %v1468_v38  ;;  %v3789_v49 = vpop.f32.mrb[24].mxu0 }
 0x38e   : > { %v1461_v39 = vadd.f32 %v1459_v30, %v1457_v36  ;;  %v1469_v51 = vsub.f32 %v1465_v47, %v1467_v45  ;;  %v3799_v52 = vpop.f32.mrb[24].mxu1  ;;  %v1543_v40 = vpop.f32.mrb[25].mxu0  ;;  %v1842_v4 = vmul.f32 %v3789_v49, %v3789_v49 }
 0x38f   : > { %v4508_v53 = vadd.f32 %v1462_v48, %v4436_v2  ;;  %v4511_v56 = vadd.f32 %v1470_v31, %v4441_v3  ;;  %v1628_v57 = vpop.f32.mrb[25].mxu1  ;;  %3805 = vmatprep.mubr.msk.f32.mxu0 %vm437_vm3, %v1543_v40  ;;  %v1850_v3 = vmul.f32 %v3799_v52, %v3799_v52 }
 0x390   : > { %v4515_v61 = vadd.f32 %v1461_v39, %v4445_v5  ;;  %v4518_v1 = vadd.f32 %v1469_v51, %v4450_v6  ;;  %3817 = vmatprep.mubr.msk.f32.mxu1 %vm539_vm4, %v1628_v57  ;;  %3806 = vmatmul.mubr.msk.f32.vlgmr.msra.gmra.mrb[28].mxu0 %vm437_vm3, %v3789_v49  ;;  %v1841_v5 = vmul.f32 %v1543_v40, %v1543_v40 }
 0x391   : > { %3818 = vmatmul.mubr.msk.f32.vlgmr.msra.gmra.mrb[28].mxu1 %vm539_vm4, %v3799_v52  ;;  %4008 = vmatpush3.bf16.msra.mxu0 %v4005_v27  ;;  %v3792_v2 = vpop.f32.mrb[26].mxu0  ;;  %v1849_v62 = vmul.f32 %v1628_v57, %v1628_v57 }
 0x392   : > { %4012 = vmatpush3.bf16.msra.mxu1 %v4009_v28  ;;  %v1844_v50 = vmul.f32 %v3792_v2, %v3792_v2  ;;  %v3802_v54 = vpop.f32.mrb[26].mxu1  ;;  %v1553_v59 = vpop.f32.mrb[27].mxu0  ;;  %3843 = vmatprep.subr.msk.mxu0 %vm450_vm1, %v4265_v9 }
 0x393   : > { %v1852_v6 = vmul.f32 %v3802_v54, %v3802_v54  ;;  %v1843_v60 = vmul.f32 %v1553_v59, %v1553_v59  ;;  %v1638_v7 = vpop.f32.mrb[27].mxu1  ;;  %3808 = vmatprep.mubr.msk.f32.mxu0 %vm437_vm3, %v1553_v59  ;;  %4014 = vmatprep.subr.bf16.mxu1 %v4267_v10 }
 0x394   : > { %v1846_v55 = vadd.f32 %v1844_v50, %v1842_v4  ;;  %v1851_v58 = vmul.f32 %v1638_v7, %v1638_v7  ;;  %3820 = vmatprep.mubr.msk.f32.mxu1 %vm539_vm4, %v1638_v7  ;;  %3809 = vmatmul.mubr.msk.f32.gmra.mrb[30].mxu0 %vm437_vm3, %v3792_v2 }
 0x395   : > { %v1854_v63 = vadd.f32 %v1852_v6, %v1850_v3  ;;  %v1845_v8 = vadd.f32 %v1843_v60, %v1841_v5  ;;  %3821 = vmatmul.mubr.msk.f32.gmra.mrb[30].mxu1 %vm539_vm4, %v3802_v54  ;;  %3827 = vmatprep.mubr.msk.f32.mxu0 %vm254_vm0, %v4235_v0 }
 0x396   : > { %v4533_v15 = vadd.f32 %v1846_v55, %v4465_v20  ;;  %v1853_v16 = vadd.f32 %v1851_v58, %v1849_v62  ;;  %3837 = vmatprep.mubr.msk.f32.mxu1 %vm254_vm0, %v4235_v0  ;;  %v4566_v20 = vld [vmem:[%s4245_s11 + $0x30] sm:$0xff] }
 0x397   : > { %v4538_v17 = vadd.f32 %v1854_v63, %v4470_v22  ;;  %v4541_v18 = vadd.f32 %v1845_v8, %v4473_v23  ;;  %v4017_v22 = vpack.c.bf16 %v4566_v20, %v4498_v25  ;;  %v4021_v23 = vpack.c.bf16 %v4569_v21, %v4501_v26 }
 0x398   : > { %v4544_v19 = vadd.f32 %v1853_v16, %v4476_v24  ;;  %3828 = vmatmul.mubr.msk.f32.vlgmr.msra.gmra.mrb[32].mxu0 %vm254_vm0, %v4272_v11  ;;  %v2676_v16 = vld [vmem:[%s4250_s14 + $0x38] sm:$0xff]  ;;  %s3482_s14 = sshll.u32 %s4204_s22, 4  ;;  %s4152_s22 = smov [#allocation2]  }
 0x399   : > { %3838 = vmatmul.mubr.msk.f32.vlgmr.msra.gmra.mrb[32].mxu1 %vm254_vm0, %v4272_v11  ;;  %3830 = vmatprep.mubr.msk.f32.mxu0 %vm254_vm0, %v4277_v12  ;;  %s4730_s25 = scalar_lea.hbm %s4777_s5, %s3482_s14  ;;  %s4092_s6 = sshll.u32 %s4152_s22, 4  ;;  %s4093_s6 = int_to_ptr.vmem [resolvable:$false] %s4092_s6 }
 0x39a   : > { %3840 = vmatprep.mubr.msk.f32.mxu1 %vm254_vm0, %v4277_v12  ;;  %3844 = vmatpush3.msk.msra.mxu0 %vm450_vm1, %v4265_v9  ;;  %s4094_s7 = scalar_lea.vmem %s4093_s6, 32 }
 0x39b   : > { %4016 = vmatpush3.bf16.msra.mxu1 %v4267_v10  ;;  %4018 = vmatprep.subr.bf16.mxu0 %v4017_v22 }
 0x39c   : > { %3831 = vmatmul.mubr.msk.f32.gmra.mrb[34].mxu0 %vm254_vm0, %v4291_v13  ;;  %3855 = vmatprep.subr.msk.mxu1 %vm552_vm2, %v4296_v14 }
 0x39d   : > { %3841 = vmatmul.mubr.msk.f32.gmra.mrb[34].mxu1 %vm254_vm0, %v4291_v13 }
 0x39f   : > { %3856 = vmatpush3.msk.msra.mxu1 %vm552_vm2, %v4296_v14 }
 0x3a0   : > { %4022 = vmatprep.subr.bf16.mxu1 %v4021_v23 }
 0x463   : > { %v3807_v24 = vpop.f32.mrb[28].mxu0 }
 0x464   : > { %v3819_v27 = vpop.f32.mrb[28].mxu1  ;;  %v1725_v28 = vpop.f32.mrb[29].mxu0 }
 0x465   : > { %v1858_v29 = vmul.f32 %v3819_v27, %v3807_v24  ;;  %v1822_v32 = vpop.f32.mrb[29].mxu1 }
 0x466   : > { %v1857_v33 = vmul.f32 %v1822_v32, %v1725_v28 }
 0x467   : > { %v3810_v34 = vpop.f32.mrb[30].mxu0 }
 0x468   : > { %v1868_v35 = vmul.f32 %v3819_v27, %v3810_v34  ;;  %v3822_v36 = vpop.f32.mrb[30].mxu1  ;;  %v1735_v37 = vpop.f32.mrb[31].mxu0 }
 0x469   : > { %v1860_v38 = vmul.f32 %v3822_v36, %v3810_v34  ;;  %v1866_v41 = vmul.f32 %v3822_v36, %v3807_v24  ;;  %v1867_v42 = vmul.f32 %v1822_v32, %v1735_v37  ;;  %v1832_v43 = vpop.f32.mrb[31].mxu1 }
 0x46a   : > { %v1859_v25 = vmul.f32 %v1832_v43, %v1735_v37  ;;  %v1865_v44 = vmul.f32 %v1832_v43, %v1725_v28 }
 0x46b   : > { %v1862_v45 = vadd.f32 %v1860_v38, %v1858_v29  ;;  %v1870_v26 = vsub.f32 %v1866_v41, %v1868_v35  ;;  %v3829_v46 = vpop.f32.mrb[32].mxu0 }
 0x46c   : > { %v1861_v30 = vadd.f32 %v1859_v25, %v1857_v33  ;;  %v1869_v47 = vsub.f32 %v1865_v44, %v1867_v42  ;;  %v3839_v48 = vpop.f32.mrb[32].mxu1  ;;  %v1943_v31 = vpop.f32.mrb[33].mxu0  ;;  %v2242_v57 = vmul.f32 %v3829_v46, %v3829_v46 }
 0x46d   : > { %v4576_v49 = vadd.f32 %v1862_v45, %v4508_v53  ;;  %v4579_v39 = vadd.f32 %v1870_v26, %v4511_v56  ;;  %v2028_v51 = vpop.f32.mrb[33].mxu1  ;;  %3845 = vmatprep.mubr.msk.f32.mxu0 %vm437_vm3, %v1943_v31  ;;  %v2250_v56 = vmul.f32 %v3839_v48, %v3839_v48 }
 0x46e   : > { %v4583_v52 = vadd.f32 %v1861_v30, %v4515_v61  ;;  %v4586_v40 = vadd.f32 %v1869_v47, %v4518_v1  ;;  %3857 = vmatprep.mubr.msk.f32.mxu1 %vm539_vm4, %v2028_v51  ;;  %3846 = vmatmul.mubr.msk.f32.vlgmr.msra.gmra.mrb[36].mxu0 %vm437_vm3, %v3829_v46  ;;  %v2241_v61 = vmul.f32 %v1943_v31, %v1943_v31 }
 0x46f   : > { %3858 = vmatmul.mubr.msk.f32.vlgmr.msra.gmra.mrb[36].mxu1 %vm539_vm4, %v3839_v48  ;;  %4020 = vmatpush3.bf16.msra.mxu0 %v4017_v22  ;;  %v3832_v53 = vpop.f32.mrb[34].mxu0  ;;  %v2249_v59 = vmul.f32 %v2028_v51, %v2028_v51 }
 0x470   : > { %4024 = vmatpush3.bf16.msra.mxu1 %v4021_v23  ;;  %v2244_v2 = vmul.f32 %v3832_v53, %v3832_v53  ;;  %v3842_v4 = vpop.f32.mrb[34].mxu1  ;;  %v1953_v3 = vpop.f32.mrb[35].mxu0  ;;  %3883 = vmatprep.subr.msk.mxu0 %vm450_vm1, %v4265_v9 }
 0x471   : > { %v2252_v1 = vmul.f32 %v3842_v4, %v3842_v4  ;;  %v2243_v50 = vmul.f32 %v1953_v3, %v1953_v3  ;;  %v2038_v54 = vpop.f32.mrb[35].mxu1  ;;  %3848 = vmatprep.mubr.msk.f32.mxu0 %vm437_vm3, %v1953_v3  ;;  %4026 = vmatprep.subr.bf16.mxu1 %v4267_v10 }
 0x472   : > { %v2246_v5 = vadd.f32 %v2244_v2, %v2242_v57  ;;  %v2251_v6 = vmul.f32 %v2038_v54, %v2038_v54  ;;  %3860 = vmatprep.mubr.msk.f32.mxu1 %vm539_vm4, %v2038_v54  ;;  %3849 = vmatmul.mubr.msk.f32.gmra.mrb[38].mxu0 %vm437_vm3, %v3832_v53 }
 0x473   : > { %v2254_v60 = vadd.f32 %v2252_v1, %v2250_v56  ;;  %v2245_v7 = vadd.f32 %v2243_v50, %v2241_v61  ;;  %3861 = vmatmul.mubr.msk.f32.gmra.mrb[38].mxu1 %vm539_vm4, %v3842_v4  ;;  %3867 = vmatprep.mubr.msk.f32.mxu0 %vm254_vm0, %v4235_v0 }
 0x474   : > { %v4601_v62 = vadd.f32 %v2246_v5, %v4533_v15  ;;  %v2253_v55 = vadd.f32 %v2251_v6, %v2249_v59  ;;  %3877 = vmatprep.mubr.msk.f32.mxu1 %vm254_vm0, %v4235_v0  ;;  %v2674_v15 = vld [vmem:[%s4245_s11 + $0x38] sm:$0xff]  ;;  %s230_s11 = sand.u32 1, %s4142_s19  }
 0x475   : > { %v4606_v58 = vadd.f32 %v2254_v60, %v4538_v17  ;;  %v4609_v63 = vadd.f32 %v2245_v7, %v4541_v18  ;;  %v4029_v17 = vpack.c.bf16 %v2674_v15, %v4566_v20  ;;  %v4033_v18 = vpack.c.bf16 %v2676_v16, %v4569_v21  ;;  %s231_s15 = scalar_lea.vmem [#allocation2], %s230_s11  ;;  %s3263_s26 = scalar_lea.sflag [#allocation3], %s230_s11 }
 0x476   : > { %v4612_v8 = vadd.f32 %v2253_v55, %v4544_v19  ;;  %3868 = vmatmul.mubr.msk.f32.vlgmr.msra.gmra.mrb[40].mxu0 %vm254_vm0, %v4272_v11  ;;  %s3275_s16 = sshll.u32 %s231_s15, 4  ;;  %s4732_s16 = int_to_ptr.vmem [resolvable:$true] %s3275_s16 }
 0x477   : > { %3878 = vmatmul.mubr.msk.f32.vlgmr.msra.gmra.mrb[40].mxu1 %vm254_vm0, %v4272_v11  ;;  %3870 = vmatprep.mubr.msk.f32.mxu0 %vm254_vm0, %v4277_v12  ;;  %s4088_s30 = scalar_lea.vmem %s4732_s16, 16  ;;  %p4095_p0 = scmp.lt.s32.totalorder %s4732_s16, %s4093_s6 }
 0x478   : > { %3880 = vmatprep.mubr.msk.f32.mxu1 %vm254_vm0, %v4277_v12  ;;  %3884 = vmatpush3.msk.msra.mxu0 %vm450_vm1, %v4265_v9  ;;  %p4089_p11 = scmp.ne.s32.totalorder %s4732_s16, %s4088_s30  ;;  %p4096_p1 = scmp.lt.s32.totalorder %s4094_s7, %s4088_s30 }
 0x479   : > { %4028 = vmatpush3.bf16.msra.mxu1 %v4267_v10  ;;  %4030 = vmatprep.subr.bf16.mxu0 %v4029_v17 }
 0x47a   : > { %3871 = vmatmul.mubr.msk.f32.gmra.mrb[42].mxu0 %vm254_vm0, %v4291_v13  ;;  %3895 = vmatprep.subr.msk.mxu1 %vm552_vm2, %v4296_v14  ;;  %p4090_p12 = pnand %p4089_p11, %p4221_p5  ;;  %p4097_p2 = por %p4096_p1, %p4095_p0 }
 0x47b   : > { %3881 = vmatmul.mubr.msk.f32.gmra.mrb[42].mxu1 %vm254_vm0, %v4291_v13 }
 0x47c   : > { %p4091_p13 = pneg %p4090_p12 }
 0x47d   : > { %3896 = vmatpush3.msk.msra.mxu1 %vm552_vm2, %v4296_v14 }
 0x47e   : > { %4034 = vmatprep.subr.bf16.mxu1 %v4033_v18  ;;  %p4098_p3 = pnand %p4097_p2, %p4091_p13 }
 0x541   : > { %v3847_v19 = vpop.f32.mrb[36].mxu0 }
 0x542   : > { %v3859_v22 = vpop.f32.mrb[36].mxu1  ;;  %v2125_v23 = vpop.f32.mrb[37].mxu0 }
 0x543   : > { %v2258_v24 = vmul.f32 %v3859_v22, %v3847_v19  ;;  %v2222_v27 = vpop.f32.mrb[37].mxu1 }
 0x544   : > { %v2257_v28 = vmul.f32 %v2222_v27, %v2125_v23 }
 0x545   : > { %v3850_v29 = vpop.f32.mrb[38].mxu0 }
 0x546   : > { %v2268_v32 = vmul.f32 %v3859_v22, %v3850_v29  ;;  %v3862_v33 = vpop.f32.mrb[38].mxu1  ;;  %v2135_v34 = vpop.f32.mrb[39].mxu0 }
 0x547   : > { %v2260_v35 = vmul.f32 %v3862_v33, %v3850_v29  ;;  %v2266_v36 = vmul.f32 %v3862_v33, %v3847_v19  ;;  %v2267_v37 = vmul.f32 %v2222_v27, %v2135_v34  ;;  %v2232_v38 = vpop.f32.mrb[39].mxu1 }
 0x548   : > { %v2259_v41 = vmul.f32 %v2232_v38, %v2135_v34  ;;  %v2265_v20 = vmul.f32 %v2232_v38, %v2125_v23 }
 0x549   : > { %v2262_v42 = vadd.f32 %v2260_v35, %v2258_v24  ;;  %v2270_v21 = vsub.f32 %v2266_v36, %v2268_v32  ;;  %v3869_v43 = vpop.f32.mrb[40].mxu0 }
 0x54a   : > { %v2261_v25 = vadd.f32 %v2259_v41, %v2257_v28  ;;  %v2269_v44 = vsub.f32 %v2265_v20, %v2267_v37  ;;  %v3879_v45 = vpop.f32.mrb[40].mxu1  ;;  %v2343_v26 = vpop.f32.mrb[41].mxu0  ;;  %v2642_v51 = vmul.f32 %v3869_v43, %v3869_v43 }
 0x54b   : > { %v4638_v46 = vadd.f32 %v2262_v42, %v4576_v49  ;;  %v4641_v30 = vadd.f32 %v2270_v21, %v4579_v39  ;;  %v2428_v47 = vpop.f32.mrb[41].mxu1  ;;  %3885 = vmatprep.mubr.msk.f32.mxu0 %vm437_vm3, %v2343_v26  ;;  %v2650_v39 = vmul.f32 %v3879_v45, %v3879_v45 }
 0x54c   : > { %v4645_v48 = vadd.f32 %v2261_v25, %v4583_v52  ;;  %v4648_v31 = vadd.f32 %v2269_v44, %v4586_v40  ;;  %3897 = vmatprep.mubr.msk.f32.mxu1 %vm539_vm4, %v2428_v47  ;;  %3886 = vmatmul.mubr.msk.f32.vlgmr.msra.gmra.mrb[44].mxu0 %vm437_vm3, %v3869_v43  ;;  %v2641_v52 = vmul.f32 %v2343_v26, %v2343_v26 }
 0x54d   : > { %3898 = vmatmul.mubr.msk.f32.vlgmr.msra.gmra.mrb[44].mxu1 %vm539_vm4, %v3879_v45  ;;  %4032 = vmatpush3.bf16.msra.mxu0 %v4029_v17  ;;  %v3872_v49 = vpop.f32.mrb[42].mxu0  ;;  %v2649_v3 = vmul.f32 %v2428_v47, %v2428_v47 }
 0x54e   : > { %4036 = vmatpush3.bf16.msra.mxu1 %v4033_v18  ;;  %v2644_v53 = vmul.f32 %v3872_v49, %v3872_v49  ;;  %v3882_v57 = vpop.f32.mrb[42].mxu1  ;;  %v2353_v56 = vpop.f32.mrb[43].mxu0  ;;  %3923 = vmatprep.subr.msk.mxu0 %vm450_vm1, %v4265_v9 }
 0x54f   : > { %v2652_v40 = vmul.f32 %v3882_v57, %v3882_v57  ;;  %v2643_v2 = vmul.f32 %v2353_v56, %v2353_v56  ;;  %v2438_v4 = vpop.f32.mrb[43].mxu1  ;;  %3888 = vmatprep.mubr.msk.f32.mxu0 %vm437_vm3, %v2353_v56  ;;  %4038 = vmatprep.subr.bf16.mxu1 %v4267_v10 }
 0x550   : > { %v2646_v61 = vadd.f32 %v2644_v53, %v2642_v51  ;;  %v2651_v1 = vmul.f32 %v2438_v4, %v2438_v4  ;;  %3900 = vmatprep.mubr.msk.f32.mxu1 %vm539_vm4, %v2438_v4  ;;  %3889 = vmatmul.mubr.msk.f32.gmra.mrb[46].mxu0 %vm437_vm3, %v3872_v49 }
 0x551   : > { %v2654_v50 = vadd.f32 %v2652_v40, %v2650_v39  ;;  %v2645_v54 = vadd.f32 %v2643_v2, %v2641_v52  ;;  %3901 = vmatmul.mubr.msk.f32.gmra.mrb[46].mxu1 %vm539_vm4, %v3882_v57  ;;  %3907 = vmatprep.mubr.msk.f32.mxu0 %vm254_vm0, %v4235_v0 }
 0x552   : > { %v4663_v59 = vadd.f32 %v2646_v61, %v4601_v62  ;;  %v2653_v5 = vadd.f32 %v2651_v1, %v2649_v3  ;;  %3917 = vmatprep.mubr.msk.f32.mxu1 %vm254_vm0, %v4235_v0 }
 0x553   : > { %v4668_v6 = vadd.f32 %v2654_v50, %v4606_v58  ;;  %v4671_v60 = vadd.f32 %v2645_v54, %v4609_v63 }
 0x554   : > { %v4674_v7 = vadd.f32 %v2653_v5, %v4612_v8  ;;  %3908 = vmatmul.mubr.msk.f32.vlgmr.msra.gmra.mrb[48].mxu0 %vm254_vm0, %v4272_v11 }
 0x555   : > { %3918 = vmatmul.mubr.msk.f32.vlgmr.msra.gmra.mrb[48].mxu1 %vm254_vm0, %v4272_v11  ;;  %3910 = vmatprep.mubr.msk.f32.mxu0 %vm254_vm0, %v4277_v12 }
 0x556   : > { %3920 = vmatprep.mubr.msk.f32.mxu1 %vm254_vm0, %v4277_v12  ;;  %3924 = vmatpush3.msk.msra.mxu0 %vm450_vm1, %v4265_v9 }
 0x557   : > { %4040 = vmatpush3.bf16.msra.mxu1 %v4267_v10  ;;  %3943 = vmatprep.subr.msk.mxu0 %vm450_vm1, %v4265_v9 }
 0x558   : > { %3911 = vmatmul.mubr.msk.f32.gmra.mrb[50].mxu0 %vm254_vm0, %v4291_v13  ;;  %3935 = vmatprep.subr.msk.mxu1 %vm552_vm2, %v4296_v14 }
 0x559   : > { %3921 = vmatmul.mubr.msk.f32.gmra.mrb[50].mxu1 %vm254_vm0, %v4291_v13 }
 0x55b   : > { %3936 = vmatpush3.msk.msra.mxu1 %vm552_vm2, %v4296_v14 }
 0x55c   : > { %4042 = vmatprep.subr.bf16.mxu1 %v4267_v10 }
 0x61f   : > { %v3887_v0 = vpop.f32.mrb[44].mxu0 }
 0x620   : > { %v3899_v11 = vpop.f32.mrb[44].mxu1  ;;  %v2525_v12 = vpop.f32.mrb[45].mxu0 }
 0x621   : > { %v2658_v62 = vmul.f32 %v3899_v11, %v3887_v0  ;;  %v2622_v55 = vpop.f32.mrb[45].mxu1 }
 0x622   : > { %v2657_v58 = vmul.f32 %v2622_v55, %v2525_v12 }
 0x623   : > { %v3890_v63 = vpop.f32.mrb[46].mxu0 }
 0x624   : > { %v2668_v8 = vmul.f32 %v3899_v11, %v3890_v63  ;;  %v3902_v15 = vpop.f32.mrb[46].mxu1  ;;  %v2535_v16 = vpop.f32.mrb[47].mxu0 }
 0x625   : > { %v2660_v17 = vmul.f32 %v3902_v15, %v3890_v63  ;;  %v2666_v18 = vmul.f32 %v3902_v15, %v3887_v0  ;;  %v2667_v19 = vmul.f32 %v2622_v55, %v2535_v16  ;;  %v2632_v22 = vpop.f32.mrb[47].mxu1 }
 0x626   : > { %v2659_v13 = vmul.f32 %v2632_v22, %v2535_v16  ;;  %v2665_v23 = vmul.f32 %v2632_v22, %v2525_v12 }
 0x627   : > { %v2662_v24 = vadd.f32 %v2660_v17, %v2658_v62  ;;  %v2670_v27 = vsub.f32 %v2666_v18, %v2668_v8  ;;  %v3909_v28 = vpop.f32.mrb[48].mxu0 }
 0x628   : > { %v2661_v29 = vadd.f32 %v2659_v13, %v2657_v58  ;;  %v2669_v32 = vsub.f32 %v2665_v23, %v2667_v19  ;;  %v3919_v33 = vpop.f32.mrb[48].mxu1  ;;  %v2743_v34 = vpop.f32.mrb[49].mxu0  ;;  %v3042_v42 = vmul.f32 %v3909_v28, %v3909_v28 }
 0x629   : > { %v2664_v35 = vadd.f32 %v2662_v24, %v4638_v46  ;;  %v2672_v36 = vadd.f32 %v2670_v27, %v4641_v30  ;;  %v2828_v37 = vpop.f32.mrb[49].mxu1  ;;  %3925 = vmatprep.mubr.msk.f32.mxu0 %vm437_vm3, %v2743_v34  ;;  %v3050_v21 = vmul.f32 %v3919_v33, %v3919_v33  ;;  %v3041_v45 = vmul.f32 %v2743_v34, %v2743_v34 }
 0x62a   : > { %v2663_v38 = vadd.f32 %v2661_v29, %v4645_v48  ;;  %v2671_v41 = vadd.f32 %v2669_v32, %v4648_v31  ;;  %3937 = vmatprep.mubr.msk.f32.mxu1 %vm539_vm4, %v2828_v37  ;;  %3926 = vmatmul.mubr.msk.f32.vlgmr.msra.gmra.mrb[52].mxu0 %vm437_vm3, %v3909_v28  ;;  %v3049_v47 = vmul.f32 %v2828_v37, %v2828_v37 }
 0x62b   : > { %3938 = vmatmul.mubr.msk.f32.vlgmr.msra.gmra.mrb[52].mxu1 %vm539_vm4, %v3919_v33  ;;  %v3912_v20 = vpop.f32.mrb[50].mxu0  ;;  %3944 = vmatpush3.msk.msra.mxu0 %vm450_vm1, %v4265_v9 }
 0x62c   : > { %v3044_v43 = vmul.f32 %v3912_v20, %v3912_v20  ;;  %v3922_v25 = vpop.f32.mrb[50].mxu1  ;;  %v2753_v44 = vpop.f32.mrb[51].mxu0  ;;  %4044 = vmatpush3.bf16.msra.mxu1 %v4267_v10 }
 0x62d   : > { %v3052_v26 = vmul.f32 %v3922_v25, %v3922_v25  ;;  %v3043_v46 = vmul.f32 %v2753_v44, %v2753_v44  ;;  %v2838_v30 = vpop.f32.mrb[51].mxu1  ;;  %3928 = vmatprep.mubr.msk.f32.mxu0 %vm437_vm3, %v2753_v44  ;;  %3952 = vmatprep.subr.msk.mxu1 %vm552_vm2, %v4296_v14 }
 0x62e   : > { %v3046_v48 = vadd.f32 %v3044_v43, %v3042_v42  ;;  %v3051_v31 = vmul.f32 %v2838_v30, %v2838_v30  ;;  %3940 = vmatprep.mubr.msk.f32.mxu1 %vm539_vm4, %v2838_v30  ;;  %3929 = vmatmul.mubr.msk.f32.gmra.mrb[54].mxu0 %vm437_vm3, %v3912_v20 }
 0x62f   : > { %v3054_v9 = vadd.f32 %v3052_v26, %v3050_v21  ;;  %v3045_v49 = vadd.f32 %v3043_v46, %v3041_v45  ;;  %3941 = vmatmul.mubr.msk.f32.gmra.mrb[54].mxu1 %vm539_vm4, %v3922_v25 }
 0x630   : > { %v3048_v10 = vadd.f32 %v3046_v48, %v4663_v59  ;;  %v3053_v51 = vadd.f32 %v3051_v31, %v3049_v47  ;;  %3953 = vmatpush3.msk.msra.mxu1 %vm552_vm2, %v4296_v14 }
 0x631   : > { %v3056_v39 = vadd.f32 %v3054_v9, %v4668_v6  ;;  %v3047_v53 = vadd.f32 %v3045_v49, %v4671_v60 }
 0x632   : > { %v3055_v57 = vadd.f32 %v3053_v51, %v4674_v7 }
 0x633   : > { %3945 = vmatprep.mubr.msk.f32.mxu0 %vm437_vm3, %v3047_v53 }
 0x634   : > { %3954 = vmatprep.mubr.msk.f32.mxu1 %vm539_vm4, %v3055_v57  ;;  %3946 = vmatmul.mubr.msk.f32.vlgmr.msra.gmra.mrb[56].mxu0 %vm437_vm3, %v3048_v10 }
 0x635   : > { %3955 = vmatmul.mubr.msk.f32.vlgmr.msra.gmra.mrb[56].mxu1 %vm539_vm4, %v3056_v39 }
 0x6fd   : > { %v3927_v56 = vpop.f32.mrb[52].mxu0 }
 0x6fe   : > { %v3939_v52 = vpop.f32.mrb[52].mxu1  ;;  %v2925_v40 = vpop.f32.mrb[53].mxu0 }
 0x6ff   : > { %v3058_v2 = vmul.f32 %v3939_v52, %v3927_v56  ;;  %v3022_v4 = vpop.f32.mrb[53].mxu1 }
 0x700   : > { %v3057_v14 = vmul.f32 %v3022_v4, %v2925_v40 }
 0x701   : > { %v3930_v3 = vpop.f32.mrb[54].mxu0 }
 0x702   : > { %v3068_v61 = vmul.f32 %v3939_v52, %v3930_v3  ;;  %v3942_v1 = vpop.f32.mrb[54].mxu1  ;;  %v2935_v50 = vpop.f32.mrb[55].mxu0 }
 0x703   : > { %v3060_v54 = vmul.f32 %v3942_v1, %v3930_v3  ;;  %v3066_v59 = vmul.f32 %v3942_v1, %v3927_v56  ;;  %v3067_v5 = vmul.f32 %v3022_v4, %v2935_v50  ;;  %v3032_v6 = vpop.f32.mrb[55].mxu1 }
 0x704   : > { %v3059_v60 = vmul.f32 %v3032_v6, %v2935_v50  ;;  %v3065_v7 = vmul.f32 %v3032_v6, %v2925_v40 }
 0x705   : > { %v3062_v0 = vadd.f32 %v3060_v54, %v3058_v2  ;;  %v3070_v11 = vsub.f32 %v3066_v59, %v3068_v61 }
 0x706   : > { %v3061_v12 = vadd.f32 %v3059_v60, %v3057_v14  ;;  %v3069_v62 = vsub.f32 %v3065_v7, %v3067_v5 }
 0x707   : > { %v3064_v55 = vadd.f32 %v3062_v0, %v2664_v35  ;;  %v3072_v58 = vadd.f32 %v3070_v11, %v2672_v36  ;;  %v3947_v63 = vpop.f32.mrb[56].mxu0 }
 0x708   : > { %v3063_v8 = vadd.f32 %v3061_v12, %v2663_v38  ;;  %v3071_v15 = vadd.f32 %v3069_v62, %v2671_v41  ;;  %v3956_v16 = vpop.f32.mrb[56].mxu1  ;;  %v3151_v17 = vpop.f32.mrb[57].mxu0 }
 0x709   : > { %v3074_v18 = vmul.f32 %v3064_v55, %v3064_v55  ;;  %v3076_v19 = vmul.f32 %v3072_v58, %v3072_v58  ;;  %v3242_v22 = vmul.f32 %v3956_v16, %v3947_v63  ;;  %v3232_v13 = vpop.f32.mrb[57].mxu1 }
 0x70a   : > { %v3073_v23 = vmul.f32 %v3063_v8, %v3063_v8  ;;  %v3075_v24 = vmul.f32 %v3071_v15, %v3071_v15  ;;  %v3241_v27 = vmul.f32 %v3232_v13, %v3151_v17 }
 0x70b   : > { %v3078_v28 = vadd.f32 %v3076_v19, %v3074_v18  ;;  %v3244_v29 = vadd.f32 4.9e-09, %v3242_v22 }
 0x70c   : > { %v3077_v32 = vadd.f32 %v3075_v24, %v3073_v23  ;;  %v3243_v33 = vadd.f32 4.9e-09, %v3241_v27 }
 0x70d   : > { %4084 = vrcp.f32 %v3244_v29 }
 0x70e   : > { %4086 = vrcp.f32 %v3243_v33 }
 0x717   : > { %v4085_v34 = vpop.eup %4084 }
 0x718   : > { %v4087_v35 = vpop.eup %4086  ;;  %v3248_v36 = vmul.f32 %v4085_v34, %v3078_v28 }
 0x719   : > { %v3246_v37 = vmul.f32 %v4087_v35, %v3077_v32 }
 0x71a   : > { %v3251_v38 = vsel %vm3249_vm5, %v3248_v36, 0.0 }
 0x71b   : > { %v3250_v41 = vsel %vm3249_vm5, %v3246_v37, 0.0 }
 0x71c   : > { %v3252_v20 = vadd.f32 %v3251_v38, %v3250_v41 }
 0x71e   : > { %v3253_v42 = vrot.slane %v3252_v20, 4 }
 0x720   : > { %v3254_v21 = vadd.f32 %v3253_v42, %v3252_v20 }
 0x722   : > { %v3255_v43 = vrot.slane %v3254_v21, 2 }
 0x724   : > { %v3256_v25 = vadd.f32 %v3255_v43, %v3254_v21 }
 0x726   : > { %v3257_v44 = vrot.slane %v3256_v25, 1 }
 0x728   : > { %v3258_v45 = vadd.f32 %v3257_v44, %v3256_v25 }
 0x72a   : > { %v3259_v26 = vmul.f32 0.11111111, %v3258_v45 }
 0x72c   : > { %3261 = vst.msk [vmem:[%s231_s15] sm:$0x1] %vm3260_vm6, %v3259_v26 }
 0x72d   : > { %4101 = shalt.err (!%p4098_p3)
}
 0x72e   : > { %s4102_s8 = scalar_lea.hbm %s4730_s25, 16  ;;  %s4106_s12 = scalar_lea.hbm %s4777_s5, 32 }
 0x72f   : > { %p4103_p4 = scmp.ne.s32.totalorder %s4730_s25, %s4102_s8  ;;  %p4107_p9 = scmp.lt.u32.totalorder %s4730_s25, %s4777_s5 }
 0x730   : > { %p4108_p10 = scmp.lt.u32.totalorder %s4106_s12, %s4102_s8  ;;  %p4110_p12 = scmp.lt.u32.totalorder %s4102_s8, %s4730_s25 }
 0x731   : > { %p4104_p7 = pnand %p4103_p4, %p4221_p5 }
 0x732   : > { %p4109_p11 = por %p4108_p10, %p4107_p9 }
 0x733   : > { %p4105_p8 = pneg %p4104_p7 }
 0x734   : > { %p4111_p13 = por %p4110_p12, %p4109_p11 }
 0x736   : > { %p4112_p0 = pnand %p4111_p13, %p4105_p8 }
 0x738   : > { %4115 = shalt.err (!%p4112_p0)
}
 0x739   : > { %4045 = dma.vmem_to_hbm [thread:$0]  (%p4221_p5), %s4732_s16, 16, %s4730_s25, %s3263_s26  }
 0x73a PF: > { %p4051_p1 = scmp.ge.s32.totalorder %s4150_s21, 2  ;;  %s3287_s14 = sand.u32 1, %s4138_s18  }
 0x73b   : > { %s3288_s15 = scalar_lea.sflag [#allocation3], %s3287_s14 }
 0x73c   : > { %p4048_p2 = pnand %p4051_p1, %p4225_p6 }
 0x73e   : > { %4133 = dma.done.wait (!%p4048_p2), %s3288_s15, 16  }
 0x73f   : > { %4135 = vsyncadd (!%p4048_p2), %s3288_s15, 4294967280  ;;  %p15_p3 = scmp.ge.s32.totalorder %s4208_s24, 4   ;;  %s4780_s18 = smov %s4142_s19 }
 0x740   : > { %s4781_s19 = smov %s4146_s20  ;;  %s4782_s20 = smov %s4219_s27 }
 0x741   : > { %s4783_s21 = smov %s4208_s24  ;;  %17 = sbr.rel (!%p15_p3) target bundleno = 3 (0x3), region = 78 }
 0x748   :  { %3292 = vsyncpa [#allocation3], 1 }
 0x749   :  { %3294 = vsyncpa [#allocation3 + $0x1], 1 }

</bundles_post_ra>
